<compile_context>
chip_gen: v6e
topology: v6e:2x2x1
jax: 0.10.0
libtpu: 0.0.40
codegen_flags: <defaults>
</compile_context>

<pallas_src>
import jax
import jax.numpy as jnp
from jax import lax
from jax.experimental import pallas as pl
from jax.experimental.pallas import tpu as pltpu

THETA = 2.5        # adaptiveDeltaModulation theta (default used by forward)
BN_EPS = 1e-5      # nn.BatchNorm1d default eps


def _adaptive_slstm_kernel(x_ref,
                           w_ih1_ref, w_hh1_ref, b1_ref, thr1_ref,
                           gamma_ref, beta_ref,
                           w_ih2_ref, w_hh2_ref, b2_ref, thr2_ref,
                           w_fc_ref, b_fc_ref,
                           out_ref,
                           proj_ref):
    T, B, F = x_ref.shape
    H = w_hh1_ref.shape[0]           # hidden width (packed gates: 4*H lanes)
    G = 4 * H
    cdt = w_hh1_ref.dtype            # matmul-operand dtype (bf16 or f32)
    f32 = jnp.float32

    # ------------- adaptiveDeltaModulation (theta = 2.5) -------------
    xv = x_ref[...]                                           # [T, B, F]
    diff = xv[:, 1:, :] - xv[:, :-1, :]                       # [T, B-1, F]
    n = B - 1
    mean_d = jnp.mean(diff, axis=1, keepdims=True)            # [T, 1, F]
    # torch.std default: unbiased (correction = 1)
    var_d = jnp.sum((diff - mean_d) ** 2, axis=1, keepdims=True) * (1.0 / (n - 1))
    a_thr = mean_d + THETA * jnp.sqrt(var_d)
    spikes = (jnp.abs(diff) > a_thr).astype(f32)              # [T, B-1, F]
    spk_train = jnp.concatenate(
        [jnp.zeros((T, 1, F), f32), spikes], axis=1)          # [T, B, F]

    # ------------- parameters: load / broadcast ONCE, outside the recurrence -------------
    w_hh1 = w_hh1_ref[...]                                    # [H, 4H]  (packed gates)
    w_ih2 = w_ih2_ref[...]                                    # [H, 4H]
    w_hh2 = w_hh2_ref[...]                                    # [H, 4H]
    thr1 = thr1_ref[0]
    thr2 = thr2_ref[0]
    b2_b = jnp.broadcast_to(b2_ref[...], (B, G))
    gamma_b = jnp.broadcast_to(gamma_ref[...], (B, H))
    beta_b = jnp.broadcast_to(beta_ref[...], (B, H))

    # ------------- slstm1 input projection: one batched matmul -> VMEM scratch -------------
    # Independent of the recurrence (off the serial chain); bias b1 folded in once.
    w_ih1_b = jnp.broadcast_to(w_ih1_ref[...], (T, F, G))     # [T, F, 4H] (bf16, ~20 KiB)
    proj = jnp.einsum('tbf,tfg->tbg', spk_train.astype(cdt), w_ih1_b,
                      preferred_element_type=jnp.float32) + b1_ref[...]
    proj_ref[...] = proj                                      # [T, B, 4H] f32 scratch

    def gate_split(g):
        # 1 sigmoid + 1 tanh over the whole packed [B, 4H] gates value, then
        # static 32-lane extracts (gate order i, f, g, o as in nn.LSTMCell).
        sg = jax.nn.sigmoid(g)
        tg = jnp.tanh(g)
        return (sg[:, 0 * H:1 * H], sg[:, 1 * H:2 * H],
                tg[:, 2 * H:3 * H], sg[:, 3 * H:4 * H])

    def step(t, carry):
        syn1, mem1, syn2, mem2, acc = carry

        # slstm2 recurrent term depends only on the PREVIOUS step's mem2:
        # issue it first so the MXU overlaps it with slstm1 + BN below.
        rec2 = jnp.dot(mem2.astype(cdt), w_hh2, preferred_element_type=jnp.float32)

        # --- slstm1 (snn.SLSTM, reset_mechanism='subtract') ---
        gates1 = proj_ref[t] + jnp.dot(mem1.astype(cdt), w_hh1,
                                       preferred_element_type=jnp.float32)
        i1, f1, g1, o1 = gate_split(gates1)
        c1 = f1 * syn1 + i1 * g1
        h1 = o1 * jnp.tanh(c1)
        reset1 = (mem1 - thr1 > 0.0).astype(f32)              # reset from previous mem
        syn1 = c1
        mem1 = h1 - reset1 * thr1
        spk1 = (mem1 - thr1 > 0.0).astype(f32)                # Heaviside fwd of fast_sigmoid

        # --- BatchNorm1d (training mode: per-feature batch stats, biased variance) ---
        mu = jnp.mean(spk1, axis=0, keepdims=True)
        var = jnp.mean((spk1 - mu) ** 2, axis=0, keepdims=True)
        spk1 = gamma_b * (spk1 - mu) * lax.rsqrt(var + BN_EPS) + beta_b

        # --- slstm2 (gates un-fused; no lane-axis concatenate copy) ---
        gates2 = jnp.dot(spk1.astype(cdt), w_ih2,
                         preferred_element_type=jnp.float32) + rec2 + b2_b
        i2, f2, g2, o2 = gate_split(gates2)
        c2 = f2 * syn2 + i2 * g2
        h2 = o2 * jnp.tanh(c2)
        reset2 = (mem2 - thr2 > 0.0).astype(f32)
        syn2 = c2
        mem2 = h2 - reset2 * thr2

        return (syn1, mem1, syn2, mem2, acc + mem2)

    z = jnp.zeros((B, H), f32)
    carry = (z, z, z, z, z)
    if T <= 8:
        # Small T: full static unroll (LLO sees the whole chain).
        for t in range(T):
            carry = step(t, carry)
    else:
        # Production-length T: bound live ranges / compile time with a real loop.
        carry = lax.fori_loop(0, T, step, carry)

    final_mem = carry[4] * (1.0 / T)
    # lane-dense [B, Cp] store; real classes live in the first C lanes
    out_ref[...] = (jnp.dot(final_mem.astype(cdt), w_fc_ref[...],
                            preferred_element_type=jnp.float32)
                    + b_fc_ref[...])


def adaptive_net_slstm(x, params, *, matmul_dtype=jnp.bfloat16):
    """x: [T, B, F] float32 -> [B, numClasses] float32.

    matmul_dtype: dtype of the MXU operands (weights + activations at dot sites).
    bf16 (default, per v6e/v7x guidance) halves weight DMA and MXU latency; pass
    jnp.float32 for an exact f32 reference.  All state / BN / threshold math is f32.
    """
    T, B, F = x.shape
    # unbiased std over the B-1 diffs divides by B-2
    assert B >= 3, "adaptiveDeltaModulation needs B >= 3 (unbiased std over B-1 diffs)"
    H = params["w_hh1"].shape[0]
    C = params["w_fc"].shape[1]
    Cp = max(128, ((C + 127) // 128) * 128)   # lane-dense output width

    mdt = matmul_dtype
    # Packed gate layout: weights stay [in, 4H] (no per-gate slab padding).
    w_ih1 = params["w_ih1"].astype(mdt)                                  # [F, 4H]
    w_hh1 = params["w_hh1"].astype(mdt)                                  # [H, 4H]
    w_ih2 = params["w_ih2"].astype(mdt)                                  # [H, 4H]
    w_hh2 = params["w_hh2"].astype(mdt)                                  # [H, 4H]
    w_fc = jnp.pad(params["w_fc"], ((0, 0), (0, Cp - C))).astype(mdt)    # [H, Cp]
    b_fc = jnp.pad(params["b_fc"], ((0, 0), (0, Cp - C)))                # [1, Cp] f32

    vmem = pl.BlockSpec(memory_space=pltpu.MemorySpace.VMEM)
    smem = pl.BlockSpec(memory_space=pltpu.MemorySpace.SMEM)

    out = pl.pallas_call(
        _adaptive_slstm_kernel,
        out_shape=jax.ShapeDtypeStruct((B, Cp), jnp.float32),
        in_specs=[vmem,                       # x
                  vmem, vmem, vmem, smem,     # slstm1: W_ih^T, W_hh^T, b, thr
                  vmem, vmem,                 # bn1: gamma, beta
                  vmem, vmem, vmem, smem,     # slstm2: W_ih^T, W_hh^T, b, thr
                  vmem, vmem],                # fc: W^T (col-padded), b (col-padded)
        out_specs=vmem,
        scratch_shapes=[pltpu.VMEM((T, B, 4 * H), jnp.float32)],   # hoisted input proj
    )(x,
      w_ih1, w_hh1, params["b1"], params["thr1"],
      params["gamma1"], params["beta1"],
      w_ih2, w_hh2, params["b2"], params["thr2"],
      w_fc, b_fc)
    return out[:, :C]


def init_params(key, input_size=14, hidden_size=32, num_classes=8):
    """Deterministic synthetic parameters (PyTorch-style uniform init)."""
    ks = jax.random.split(key, 12)
    H = hidden_size

    def u(k, shape, bound):
        return jax.random.uniform(k, shape, jnp.float32, -bound, bound)

    b1 = 1.0 / jnp.sqrt(float(H))
    bf = 1.0 / jnp.sqrt(float(H))
    params = {
        # weights stored transposed: [in, 4H] (packed gate order i, f, g, o)
        "w_ih1": u(ks[0], (input_size, 4 * H), b1),
        "w_hh1": u(ks[1], (H, 4 * H), b1),
        "b1":    u(ks[2], (1, 4 * H), b1) + u(ks[3], (1, 4 * H), b1),  # b_ih + b_hh
        "thr1":  jnp.ones((1,), jnp.float32),        # learn_threshold init = 1.0
        "gamma1": jnp.ones((1, H), jnp.float32),     # BatchNorm1d affine defaults
        "beta1":  jnp.zeros((1, H), jnp.float32),
        "w_ih2": u(ks[4], (H, 4 * H), b1),
        "w_hh2": u(ks[5], (H, 4 * H), b1),
        "b2":    u(ks[6], (1, 4 * H), b1) + u(ks[7], (1, 4 * H), b1),
        "thr2":  jnp.ones((1,), jnp.float32),
        "w_fc":  u(ks[8], (H, num_classes), bf),
        "b_fc":  u(ks[9], (1, num_classes), bf),
    }
    return params


# TODO(synk): the module's running side-state (self.meanSum / stdSum / batchNumber
# and BatchNorm running statistics) only accumulates bookkeeping and does not affect
# the returned output; it is not reproduced here.

if __name__ == "__main__":
    key = jax.random.PRNGKey(0)
    k_x, k_p = jax.random.split(key)

    T, B, F = 6, 4, 14          # small shapes; F == inputSize, B >= 3 (unbiased std)
    H, C = 32, 8                # hiddenSize, numClasses

    x = jax.random.normal(k_x, (T, B, F), jnp.float32)
    params = init_params(k_p, input_size=F, hidden_size=H, num_classes=C)

    out = adaptive_net_slstm(x, params)
    out = jax.block_until_ready(out)

    assert out.shape == (B, C), out.shape
    assert bool(jnp.all(jnp.isfinite(out)))
    print("KERNEL_OK")
</pallas_src>

<mosaic_0001>
module attributes {stable_mosaic.version = 11 : i64} {
  func.func @_adaptive_slstm_kernel(%arg0: memref<6x4x14xf32, #tpu.memory_space<vmem>>, %arg1: memref<14x128xbf16, #tpu.memory_space<vmem>>, %arg2: memref<32x128xbf16, #tpu.memory_space<vmem>>, %arg3: memref<1x128xf32, #tpu.memory_space<vmem>>, %arg4: memref<1xf32, #tpu.memory_space<smem>>, %arg5: memref<1x32xf32, #tpu.memory_space<vmem>>, %arg6: memref<1x32xf32, #tpu.memory_space<vmem>>, %arg7: memref<32x128xbf16, #tpu.memory_space<vmem>>, %arg8: memref<32x128xbf16, #tpu.memory_space<vmem>>, %arg9: memref<1x128xf32, #tpu.memory_space<vmem>>, %arg10: memref<1xf32, #tpu.memory_space<smem>>, %arg11: memref<32x128xbf16, #tpu.memory_space<vmem>>, %arg12: memref<1x128xf32, #tpu.memory_space<vmem>>, %arg13: memref<4x128xf32, #tpu.memory_space<vmem>>, %arg14: memref<6x4x128xf32, #tpu.memory_space<vmem>>) attributes {dimension_semantics = [], scalar_prefetch = 0 : i64, scratch_operands = 1 : i64, tpu.core_type = #tpu.core_type<tc>} {
    %c0 = arith.constant 0 : index
    %c0_0 = arith.constant 0 : index
    %c0_1 = arith.constant 0 : index
    %0 = vector.load %arg0[%c0, %c0_0, %c0_1] : memref<6x4x14xf32, #tpu.memory_space<vmem>>, vector<6x4x14xf32>
    %1 = vector.extract_strided_slice %0 {offsets = [0, 1, 0], sizes = [6, 3, 14], strides = [1, 1, 1]} : vector<6x4x14xf32> to vector<6x3x14xf32>
    %2 = vector.extract_strided_slice %0 {offsets = [0, 0, 0], sizes = [6, 3, 14], strides = [1, 1, 1]} : vector<6x4x14xf32> to vector<6x3x14xf32>
    %3 = arith.subf %1, %2 : vector<6x3x14xf32>
    %cst = arith.constant dense<0.000000e+00> : vector<6x14xf32>
    %4 = vector.multi_reduction <add>, %3, %cst [1] : vector<6x3x14xf32> to vector<6x14xf32>
    %5 = vector.shape_cast %4 : vector<6x14xf32> to vector<6x1x14xf32>
    %cst_2 = arith.constant 3.000000e+00 : f32
    %6 = vector.broadcast %cst_2 : f32 to vector<6x1x14xf32>
    %7 = arith.divf %5, %6 : vector<6x1x14xf32>
    %8 = vector.broadcast %7 : vector<6x1x14xf32> to vector<6x3x14xf32>
    %9 = arith.subf %3, %8 : vector<6x3x14xf32>
    %10 = arith.mulf %9, %9 : vector<6x3x14xf32>
    %cst_3 = arith.constant dense<0.000000e+00> : vector<6x14xf32>
    %11 = vector.multi_reduction <add>, %10, %cst_3 [1] : vector<6x3x14xf32> to vector<6x14xf32>
    %12 = vector.shape_cast %11 : vector<6x14xf32> to vector<6x1x14xf32>
    %cst_4 = arith.constant 5.000000e-01 : f32
    %13 = vector.broadcast %cst_4 : f32 to vector<6x1x14xf32>
    %14 = arith.mulf %12, %13 : vector<6x1x14xf32>
    %15 = math.sqrt %14 : vector<6x1x14xf32>
    %cst_5 = arith.constant 2.500000e+00 : f32
    %16 = vector.broadcast %cst_5 : f32 to vector<6x1x14xf32>
    %17 = arith.mulf %16, %15 : vector<6x1x14xf32>
    %18 = arith.addf %7, %17 : vector<6x1x14xf32>
    %19 = math.absf %3 : vector<6x3x14xf32>
    %20 = vector.broadcast %18 : vector<6x1x14xf32> to vector<6x3x14xf32>
    %21 = arith.cmpf ogt, %19, %20 : vector<6x3x14xf32>
    %22 = arith.extui %21 : vector<6x3x14xi1> to vector<6x3x14xi32>
    %23 = arith.sitofp %22 : vector<6x3x14xi32> to vector<6x3x14xf32>
    %cst_6 = arith.constant 0.000000e+00 : f32
    %24 = vector.broadcast %cst_6 : f32 to vector<6x1x14xf32>
    %25 = tpu.concatenate %24, %23 in 1 : vector<6x1x14xf32>, vector<6x3x14xf32> -> vector<6x4x14xf32>
    %c0_7 = arith.constant 0 : index
    %c0_8 = arith.constant 0 : index
    %26 = vector.load %arg2[%c0_7, %c0_8] : memref<32x128xbf16, #tpu.memory_space<vmem>>, vector<32x128xbf16>
    %c0_9 = arith.constant 0 : index
    %c0_10 = arith.constant 0 : index
    %27 = vector.load %arg7[%c0_9, %c0_10] : memref<32x128xbf16, #tpu.memory_space<vmem>>, vector<32x128xbf16>
    %c0_11 = arith.constant 0 : index
    %c0_12 = arith.constant 0 : index
    %28 = vector.load %arg8[%c0_11, %c0_12] : memref<32x128xbf16, #tpu.memory_space<vmem>>, vector<32x128xbf16>
    %c0_13 = arith.constant 0 : index
    %29 = memref.load %arg4[%c0_13] : memref<1xf32, #tpu.memory_space<smem>>
    %c0_14 = arith.constant 0 : index
    %30 = memref.load %arg10[%c0_14] : memref<1xf32, #tpu.memory_space<smem>>
    %c0_15 = arith.constant 0 : index
    %c0_16 = arith.constant 0 : index
    %31 = vector.load %arg9[%c0_15, %c0_16] : memref<1x128xf32, #tpu.memory_space<vmem>>, vector<1x128xf32>
    %32 = vector.shape_cast %31 : vector<1x128xf32> to vector<1x128xf32>
    %33 = vector.broadcast %32 : vector<1x128xf32> to vector<4x128xf32>
    %c0_17 = arith.constant 0 : index
    %c0_18 = arith.constant 0 : index
    %34 = vector.load %arg5[%c0_17, %c0_18] : memref<1x32xf32, #tpu.memory_space<vmem>>, vector<1x32xf32>
    %35 = vector.shape_cast %34 : vector<1x32xf32> to vector<1x32xf32>
    %36 = vector.broadcast %35 : vector<1x32xf32> to vector<4x32xf32>
    %c0_19 = arith.constant 0 : index
    %c0_20 = arith.constant 0 : index
    %37 = vector.load %arg6[%c0_19, %c0_20] : memref<1x32xf32, #tpu.memory_space<vmem>>, vector<1x32xf32>
    %38 = vector.shape_cast %37 : vector<1x32xf32> to vector<1x32xf32>
    %39 = vector.broadcast %38 : vector<1x32xf32> to vector<4x32xf32>
    %c0_21 = arith.constant 0 : index
    %c0_22 = arith.constant 0 : index
    %40 = vector.load %arg1[%c0_21, %c0_22] : memref<14x128xbf16, #tpu.memory_space<vmem>>, vector<14x128xbf16>
    %41 = vector.shape_cast %40 : vector<14x128xbf16> to vector<1x14x128xbf16>
    %42 = vector.broadcast %41 : vector<1x14x128xbf16> to vector<6x14x128xbf16>
    %43 = arith.truncf %25 : vector<6x4x14xf32> to vector<6x4x14xbf16>
    "tpu.trace_start"() <{level = 10 : i32, message = "tbf,tfg->tbg"}> : () -> ()
    %cst_23 = arith.constant dense<0.000000e+00> : vector<6x4x128xf32>
    %44 = tpu.matmul %43, %42, %cst_23 {dimension_numbers = #tpu.dot_dimension_numbers<[2], [1], [1], [2], [0, 0, 0, 1, 1, 2], [0], [0]>} : vector<6x4x14xbf16>, vector<6x14x128xbf16>, vector<6x4x128xf32> -> vector<6x4x128xf32>
    "tpu.trace_stop"() : () -> ()
    %c0_24 = arith.constant 0 : index
    %c0_25 = arith.constant 0 : index
    %45 = vector.load %arg3[%c0_24, %c0_25] : memref<1x128xf32, #tpu.memory_space<vmem>>, vector<1x128xf32>
    %46 = vector.shape_cast %45 : vector<1x128xf32> to vector<1x1x128xf32>
    %47 = vector.broadcast %46 : vector<1x1x128xf32> to vector<6x4x128xf32>
    %48 = arith.addf %44, %47 : vector<6x4x128xf32>
    %c0_26 = arith.constant 0 : index
    %c0_27 = arith.constant 0 : index
    %c0_28 = arith.constant 0 : index
    %49 = vector.load %arg14[%c0_26, %c0_27, %c0_28] : memref<6x4x128xf32, #tpu.memory_space<vmem>>, vector<6x4x128xf32>
    tpu.vector_store %arg14[%c0_26, %c0_27, %c0_28], %48 {strides = array<i32>} : memref<6x4x128xf32, #tpu.memory_space<vmem>>, vector<6x4x128xf32>,
    %cst_29 = arith.constant 0.000000e+00 : f32
    %50 = vector.broadcast %cst_29 : f32 to vector<4x32xf32>
    %51 = arith.truncf %50 : vector<4x32xf32> to vector<4x32xbf16>
    %cst_30 = arith.constant dense<0.000000e+00> : vector<4x128xf32>
    %52 = tpu.matmul %51, %28, %cst_30 {dimension_numbers = #tpu.dot_dimension_numbers<[1], [0], [0], [1], [0, 0, 1, 1], [], []>} : vector<4x32xbf16>, vector<32x128xbf16>, vector<4x128xf32> -> vector<4x128xf32>
    %c0_31 = arith.constant 0 : index
    %c0_32 = arith.constant 0 : index
    %c0_33 = arith.constant 0 : index
    %53 = vector.load %arg14[%c0_31, %c0_32, %c0_33] : memref<6x4x128xf32, #tpu.memory_space<vmem>>, vector<1x4x128xf32>
    %54 = vector.shape_cast %53 : vector<1x4x128xf32> to vector<4x128xf32>
    %55 = arith.truncf %50 : vector<4x32xf32> to vector<4x32xbf16>
    %cst_34 = arith.constant dense<0.000000e+00> : vector<4x128xf32>
    %56 = tpu.matmul %55, %26, %cst_34 {dimension_numbers = #tpu.dot_dimension_numbers<[1], [0], [0], [1], [0, 0, 1, 1], [], []>} : vector<4x32xbf16>, vector<32x128xbf16>, vector<4x128xf32> -> vector<4x128xf32>
    %57 = arith.addf %54, %56 : vector<4x128xf32>
    %58 = arith.negf %57 : vector<4x128xf32>
    %59 = math.exp %58 : vector<4x128xf32>
    %cst_35 = arith.constant 1.000000e+00 : f32
    %60 = vector.broadcast %cst_35 : f32 to vector<4x128xf32>
    %61 = arith.addf %60, %59 : vector<4x128xf32>
    %62 = arith.divf %60, %61 : vector<4x128xf32>
    %63 = math.tanh %57 : vector<4x128xf32>
    %64 = vector.extract_strided_slice %62 {offsets = [0, 0], sizes = [4, 32], strides = [1, 1]} : vector<4x128xf32> to vector<4x32xf32>
    %65 = vector.extract_strided_slice %62 {offsets = [0, 32], sizes = [4, 32], strides = [1, 1]} : vector<4x128xf32> to vector<4x32xf32>
    %66 = vector.extract_strided_slice %63 {offsets = [0, 64], sizes = [4, 32], strides = [1, 1]} : vector<4x128xf32> to vector<4x32xf32>
    %67 = vector.extract_strided_slice %62 {offsets = [0, 96], sizes = [4, 32], strides = [1, 1]} : vector<4x128xf32> to vector<4x32xf32>
    %68 = arith.mulf %65, %50 : vector<4x32xf32>
    %69 = arith.mulf %64, %66 : vector<4x32xf32>
    %70 = arith.addf %68, %69 : vector<4x32xf32>
    %71 = math.tanh %70 : vector<4x32xf32>
    %72 = arith.mulf %67, %71 : vector<4x32xf32>
    %73 = vector.broadcast %29 : f32 to vector<4x32xf32>
    %74 = arith.subf %50, %73 : vector<4x32xf32>
    %cst_36 = arith.constant 0.000000e+00 : f32
    %75 = vector.broadcast %cst_36 : f32 to vector<4x32xf32>
    %76 = arith.cmpf ogt, %74, %75 : vector<4x32xf32>
    %77 = arith.extui %76 : vector<4x32xi1> to vector<4x32xi32>
    %78 = arith.sitofp %77 : vector<4x32xi32> to vector<4x32xf32>
    %79 = vector.broadcast %29 : f32 to vector<4x32xf32>
    %80 = arith.mulf %78, %79 : vector<4x32xf32>
    %81 = arith.subf %72, %80 : vector<4x32xf32>
    %82 = vector.broadcast %29 : f32 to vector<4x32xf32>
    %83 = arith.subf %81, %82 : vector<4x32xf32>
    %cst_37 = arith.constant 0.000000e+00 : f32
    %84 = vector.broadcast %cst_37 : f32 to vector<4x32xf32>
    %85 = arith.cmpf ogt, %83, %84 : vector<4x32xf32>
    %86 = arith.extui %85 : vector<4x32xi1> to vector<4x32xi32>
    %87 = arith.sitofp %86 : vector<4x32xi32> to vector<4x32xf32>
    %cst_38 = arith.constant dense<0.000000e+00> : vector<32xf32>
    %88 = vector.multi_reduction <add>, %87, %cst_38 [0] : vector<4x32xf32> to vector<32xf32>
    %89 = vector.shape_cast %88 : vector<32xf32> to vector<1x32xf32>
    %cst_39 = arith.constant 4.000000e+00 : f32
    %90 = vector.broadcast %cst_39 : f32 to vector<1x32xf32>
    %91 = arith.divf %89, %90 : vector<1x32xf32>
    %92 = vector.broadcast %91 : vector<1x32xf32> to vector<4x32xf32>
    %93 = arith.subf %87, %92 : vector<4x32xf32>
    %94 = arith.mulf %93, %93 : vector<4x32xf32>
    %cst_40 = arith.constant dense<0.000000e+00> : vector<32xf32>
    %95 = vector.multi_reduction <add>, %94, %cst_40 [0] : vector<4x32xf32> to vector<32xf32>
    %96 = vector.shape_cast %95 : vector<32xf32> to vector<1x32xf32>
    %cst_41 = arith.constant 4.000000e+00 : f32
    %97 = vector.broadcast %cst_41 : f32 to vector<1x32xf32>
    %98 = arith.divf %96, %97 : vector<1x32xf32>
    %99 = vector.broadcast %91 : vector<1x32xf32> to vector<4x32xf32>
    %100 = arith.subf %87, %99 : vector<4x32xf32>
    %101 = arith.mulf %36, %100 : vector<4x32xf32>
    %cst_42 = arith.constant 9.99999974E-6 : f32
    %102 = vector.broadcast %cst_42 : f32 to vector<1x32xf32>
    %103 = arith.addf %98, %102 : vector<1x32xf32>
    %104 = math.rsqrt %103 : vector<1x32xf32>
    %105 = vector.broadcast %104 : vector<1x32xf32> to vector<4x32xf32>
    %106 = arith.mulf %101, %105 : vector<4x32xf32>
    %107 = arith.addf %106, %39 : vector<4x32xf32>
    %108 = arith.truncf %107 : vector<4x32xf32> to vector<4x32xbf16>
    %cst_43 = arith.constant dense<0.000000e+00> : vector<4x128xf32>
    %109 = tpu.matmul %108, %27, %cst_43 {dimension_numbers = #tpu.dot_dimension_numbers<[1], [0], [0], [1], [0, 0, 1, 1], [], []>} : vector<4x32xbf16>, vector<32x128xbf16>, vector<4x128xf32> -> vector<4x128xf32>
    %110 = arith.addf %109, %52 : vector<4x128xf32>
    %111 = arith.addf %110, %33 : vector<4x128xf32>
    %112 = arith.negf %111 : vector<4x128xf32>
    %113 = math.exp %112 : vector<4x128xf32>
    %cst_44 = arith.constant 1.000000e+00 : f32
    %114 = vector.broadcast %cst_44 : f32 to vector<4x128xf32>
    %115 = arith.addf %114, %113 : vector<4x128xf32>
    %116 = arith.divf %114, %115 : vector<4x128xf32>
    %117 = math.tanh %111 : vector<4x128xf32>
    %118 = vector.extract_strided_slice %116 {offsets = [0, 0], sizes = [4, 32], strides = [1, 1]} : vector<4x128xf32> to vector<4x32xf32>
    %119 = vector.extract_strided_slice %116 {offsets = [0, 32], sizes = [4, 32], strides = [1, 1]} : vector<4x128xf32> to vector<4x32xf32>
    %120 = vector.extract_strided_slice %117 {offsets = [0, 64], sizes = [4, 32], strides = [1, 1]} : vector<4x128xf32> to vector<4x32xf32>
    %121 = vector.extract_strided_slice %116 {offsets = [0, 96], sizes = [4, 32], strides = [1, 1]} : vector<4x128xf32> to vector<4x32xf32>
    %122 = arith.mulf %119, %50 : vector<4x32xf32>
    %123 = arith.mulf %118, %120 : vector<4x32xf32>
    %124 = arith.addf %122, %123 : vector<4x32xf32>
    %125 = math.tanh %124 : vector<4x32xf32>
    %126 = arith.mulf %121, %125 : vector<4x32xf32>
    %127 = vector.broadcast %30 : f32 to vector<4x32xf32>
    %128 = arith.subf %50, %127 : vector<4x32xf32>
    %cst_45 = arith.constant 0.000000e+00 : f32
    %129 = vector.broadcast %cst_45 : f32 to vector<4x32xf32>
    %130 = arith.cmpf ogt, %128, %129 : vector<4x32xf32>
    %131 = arith.extui %130 : vector<4x32xi1> to vector<4x32xi32>
    %132 = arith.sitofp %131 : vector<4x32xi32> to vector<4x32xf32>
    %133 = vector.broadcast %30 : f32 to vector<4x32xf32>
    %134 = arith.mulf %132, %133 : vector<4x32xf32>
    %135 = arith.subf %126, %134 : vector<4x32xf32>
    %136 = arith.addf %50, %135 : vector<4x32xf32>
    %137 = arith.truncf %135 : vector<4x32xf32> to vector<4x32xbf16>
    %cst_46 = arith.constant dense<0.000000e+00> : vector<4x128xf32>
    %138 = tpu.matmul %137, %28, %cst_46 {dimension_numbers = #tpu.dot_dimension_numbers<[1], [0], [0], [1], [0, 0, 1, 1], [], []>} : vector<4x32xbf16>, vector<32x128xbf16>, vector<4x128xf32> -> vector<4x128xf32>
    %c1 = arith.constant 1 : index
    %c0_47 = arith.constant 0 : index
    %c0_48 = arith.constant 0 : index
    %139 = vector.load %arg14[%c1, %c0_47, %c0_48] : memref<6x4x128xf32, #tpu.memory_space<vmem>>, vector<1x4x128xf32>
    %140 = vector.shape_cast %139 : vector<1x4x128xf32> to vector<4x128xf32>
    %141 = arith.truncf %81 : vector<4x32xf32> to vector<4x32xbf16>
    %cst_49 = arith.constant dense<0.000000e+00> : vector<4x128xf32>
    %142 = tpu.matmul %141, %26, %cst_49 {dimension_numbers = #tpu.dot_dimension_numbers<[1], [0], [0], [1], [0, 0, 1, 1], [], []>} : vector<4x32xbf16>, vector<32x128xbf16>, vector<4x128xf32> -> vector<4x128xf32>
    %143 = arith.addf %140, %142 : vector<4x128xf32>
    %144 = arith.negf %143 : vector<4x128xf32>
    %145 = math.exp %144 : vector<4x128xf32>
    %cst_50 = arith.constant 1.000000e+00 : f32
    %146 = vector.broadcast %cst_50 : f32 to vector<4x128xf32>
    %147 = arith.addf %146, %145 : vector<4x128xf32>
    %148 = arith.divf %146, %147 : vector<4x128xf32>
    %149 = math.tanh %143 : vector<4x128xf32>
    %150 = vector.extract_strided_slice %148 {offsets = [0, 0], sizes = [4, 32], strides = [1, 1]} : vector<4x128xf32> to vector<4x32xf32>
    %151 = vector.extract_strided_slice %148 {offsets = [0, 32], sizes = [4, 32], strides = [1, 1]} : vector<4x128xf32> to vector<4x32xf32>
    %152 = vector.extract_strided_slice %149 {offsets = [0, 64], sizes = [4, 32], strides = [1, 1]} : vector<4x128xf32> to vector<4x32xf32>
    %153 = vector.extract_strided_slice %148 {offsets = [0, 96], sizes = [4, 32], strides = [1, 1]} : vector<4x128xf32> to vector<4x32xf32>
    %154 = arith.mulf %151, %70 : vector<4x32xf32>
    %155 = arith.mulf %150, %152 : vector<4x32xf32>
    %156 = arith.addf %154, %155 : vector<4x32xf32>
    %157 = math.tanh %156 : vector<4x32xf32>
    %158 = arith.mulf %153, %157 : vector<4x32xf32>
    %159 = vector.broadcast %29 : f32 to vector<4x32xf32>
    %160 = arith.subf %81, %159 : vector<4x32xf32>
    %cst_51 = arith.constant 0.000000e+00 : f32
    %161 = vector.broadcast %cst_51 : f32 to vector<4x32xf32>
    %162 = arith.cmpf ogt, %160, %161 : vector<4x32xf32>
    %163 = arith.extui %162 : vector<4x32xi1> to vector<4x32xi32>
    %164 = arith.sitofp %163 : vector<4x32xi32> to vector<4x32xf32>
    %165 = vector.broadcast %29 : f32 to vector<4x32xf32>
    %166 = arith.mulf %164, %165 : vector<4x32xf32>
    %167 = arith.subf %158, %166 : vector<4x32xf32>
    %168 = vector.broadcast %29 : f32 to vector<4x32xf32>
    %169 = arith.subf %167, %168 : vector<4x32xf32>
    %cst_52 = arith.constant 0.000000e+00 : f32
    %170 = vector.broadcast %cst_52 : f32 to vector<4x32xf32>
    %171 = arith.cmpf ogt, %169, %170 : vector<4x32xf32>
    %172 = arith.extui %171 : vector<4x32xi1> to vector<4x32xi32>
    %173 = arith.sitofp %172 : vector<4x32xi32> to vector<4x32xf32>
    %cst_53 = arith.constant dense<0.000000e+00> : vector<32xf32>
    %174 = vector.multi_reduction <add>, %173, %cst_53 [0] : vector<4x32xf32> to vector<32xf32>
    %175 = vector.shape_cast %174 : vector<32xf32> to vector<1x32xf32>
    %cst_54 = arith.constant 4.000000e+00 : f32
    %176 = vector.broadcast %cst_54 : f32 to vector<1x32xf32>
    %177 = arith.divf %175, %176 : vector<1x32xf32>
    %178 = vector.broadcast %177 : vector<1x32xf32> to vector<4x32xf32>
    %179 = arith.subf %173, %178 : vector<4x32xf32>
    %180 = arith.mulf %179, %179 : vector<4x32xf32>
    %cst_55 = arith.constant dense<0.000000e+00> : vector<32xf32>
    %181 = vector.multi_reduction <add>, %180, %cst_55 [0] : vector<4x32xf32> to vector<32xf32>
    %182 = vector.shape_cast %181 : vector<32xf32> to vector<1x32xf32>
    %cst_56 = arith.constant 4.000000e+00 : f32
    %183 = vector.broadcast %cst_56 : f32 to vector<1x32xf32>
    %184 = arith.divf %182, %183 : vector<1x32xf32>
    %185 = vector.broadcast %177 : vector<1x32xf32> to vector<4x32xf32>
    %186 = arith.subf %173, %185 : vector<4x32xf32>
    %187 = arith.mulf %36, %186 : vector<4x32xf32>
    %cst_57 = arith.constant 9.99999974E-6 : f32
    %188 = vector.broadcast %cst_57 : f32 to vector<1x32xf32>
    %189 = arith.addf %184, %188 : vector<1x32xf32>
    %190 = math.rsqrt %189 : vector<1x32xf32>
    %191 = vector.broadcast %190 : vector<1x32xf32> to vector<4x32xf32>
    %192 = arith.mulf %187, %191 : vector<4x32xf32>
    %193 = arith.addf %192, %39 : vector<4x32xf32>
    %194 = arith.truncf %193 : vector<4x32xf32> to vector<4x32xbf16>
    %cst_58 = arith.constant dense<0.000000e+00> : vector<4x128xf32>
    %195 = tpu.matmul %194, %27, %cst_58 {dimension_numbers = #tpu.dot_dimension_numbers<[1], [0], [0], [1], [0, 0, 1, 1], [], []>} : vector<4x32xbf16>, vector<32x128xbf16>, vector<4x128xf32> -> vector<4x128xf32>
    %196 = arith.addf %195, %138 : vector<4x128xf32>
    %197 = arith.addf %196, %33 : vector<4x128xf32>
    %198 = arith.negf %197 : vector<4x128xf32>
    %199 = math.exp %198 : vector<4x128xf32>
    %cst_59 = arith.constant 1.000000e+00 : f32
    %200 = vector.broadcast %cst_59 : f32 to vector<4x128xf32>
    %201 = arith.addf %200, %199 : vector<4x128xf32>
    %202 = arith.divf %200, %201 : vector<4x128xf32>
    %203 = math.tanh %197 : vector<4x128xf32>
    %204 = vector.extract_strided_slice %202 {offsets = [0, 0], sizes = [4, 32], strides = [1, 1]} : vector<4x128xf32> to vector<4x32xf32>
    %205 = vector.extract_strided_slice %202 {offsets = [0, 32], sizes = [4, 32], strides = [1, 1]} : vector<4x128xf32> to vector<4x32xf32>
    %206 = vector.extract_strided_slice %203 {offsets = [0, 64], sizes = [4, 32], strides = [1, 1]} : vector<4x128xf32> to vector<4x32xf32>
    %207 = vector.extract_strided_slice %202 {offsets = [0, 96], sizes = [4, 32], strides = [1, 1]} : vector<4x128xf32> to vector<4x32xf32>
    %208 = arith.mulf %205, %124 : vector<4x32xf32>
    %209 = arith.mulf %204, %206 : vector<4x32xf32>
    %210 = arith.addf %208, %209 : vector<4x32xf32>
    %211 = math.tanh %210 : vector<4x32xf32>
    %212 = arith.mulf %207, %211 : vector<4x32xf32>
    %213 = vector.broadcast %30 : f32 to vector<4x32xf32>
    %214 = arith.subf %135, %213 : vector<4x32xf32>
    %cst_60 = arith.constant 0.000000e+00 : f32
    %215 = vector.broadcast %cst_60 : f32 to vector<4x32xf32>
    %216 = arith.cmpf ogt, %214, %215 : vector<4x32xf32>
    %217 = arith.extui %216 : vector<4x32xi1> to vector<4x32xi32>
    %218 = arith.sitofp %217 : vector<4x32xi32> to vector<4x32xf32>
    %219 = vector.broadcast %30 : f32 to vector<4x32xf32>
    %220 = arith.mulf %218, %219 : vector<4x32xf32>
    %221 = arith.subf %212, %220 : vector<4x32xf32>
    %222 = arith.addf %136, %221 : vector<4x32xf32>
    %223 = arith.truncf %221 : vector<4x32xf32> to vector<4x32xbf16>
    %cst_61 = arith.constant dense<0.000000e+00> : vector<4x128xf32>
    %224 = tpu.matmul %223, %28, %cst_61 {dimension_numbers = #tpu.dot_dimension_numbers<[1], [0], [0], [1], [0, 0, 1, 1], [], []>} : vector<4x32xbf16>, vector<32x128xbf16>, vector<4x128xf32> -> vector<4x128xf32>
    %c2 = arith.constant 2 : index
    %c0_62 = arith.constant 0 : index
    %c0_63 = arith.constant 0 : index
    %225 = vector.load %arg14[%c2, %c0_62, %c0_63] : memref<6x4x128xf32, #tpu.memory_space<vmem>>, vector<1x4x128xf32>
    %226 = vector.shape_cast %225 : vector<1x4x128xf32> to vector<4x128xf32>
    %227 = arith.truncf %167 : vector<4x32xf32> to vector<4x32xbf16>
    %cst_64 = arith.constant dense<0.000000e+00> : vector<4x128xf32>
    %228 = tpu.matmul %227, %26, %cst_64 {dimension_numbers = #tpu.dot_dimension_numbers<[1], [0], [0], [1], [0, 0, 1, 1], [], []>} : vector<4x32xbf16>, vector<32x128xbf16>, vector<4x128xf32> -> vector<4x128xf32>
    %229 = arith.addf %226, %228 : vector<4x128xf32>
    %230 = arith.negf %229 : vector<4x128xf32>
    %231 = math.exp %230 : vector<4x128xf32>
    %cst_65 = arith.constant 1.000000e+00 : f32
    %232 = vector.broadcast %cst_65 : f32 to vector<4x128xf32>
    %233 = arith.addf %232, %231 : vector<4x128xf32>
    %234 = arith.divf %232, %233 : vector<4x128xf32>
    %235 = math.tanh %229 : vector<4x128xf32>
    %236 = vector.extract_strided_slice %234 {offsets = [0, 0], sizes = [4, 32], strides = [1, 1]} : vector<4x128xf32> to vector<4x32xf32>
    %237 = vector.extract_strided_slice %234 {offsets = [0, 32], sizes = [4, 32], strides = [1, 1]} : vector<4x128xf32> to vector<4x32xf32>
    %238 = vector.extract_strided_slice %235 {offsets = [0, 64], sizes = [4, 32], strides = [1, 1]} : vector<4x128xf32> to vector<4x32xf32>
    %239 = vector.extract_strided_slice %234 {offsets = [0, 96], sizes = [4, 32], strides = [1, 1]} : vector<4x128xf32> to vector<4x32xf32>
    %240 = arith.mulf %237, %156 : vector<4x32xf32>
    %241 = arith.mulf %236, %238 : vector<4x32xf32>
    %242 = arith.addf %240, %241 : vector<4x32xf32>
    %243 = math.tanh %242 : vector<4x32xf32>
    %244 = arith.mulf %239, %243 : vector<4x32xf32>
    %245 = vector.broadcast %29 : f32 to vector<4x32xf32>
    %246 = arith.subf %167, %245 : vector<4x32xf32>
    %cst_66 = arith.constant 0.000000e+00 : f32
    %247 = vector.broadcast %cst_66 : f32 to vector<4x32xf32>
    %248 = arith.cmpf ogt, %246, %247 : vector<4x32xf32>
    %249 = arith.extui %248 : vector<4x32xi1> to vector<4x32xi32>
    %250 = arith.sitofp %249 : vector<4x32xi32> to vector<4x32xf32>
    %251 = vector.broadcast %29 : f32 to vector<4x32xf32>
    %252 = arith.mulf %250, %251 : vector<4x32xf32>
    %253 = arith.subf %244, %252 : vector<4x32xf32>
    %254 = vector.broadcast %29 : f32 to vector<4x32xf32>
    %255 = arith.subf %253, %254 : vector<4x32xf32>
    %cst_67 = arith.constant 0.000000e+00 : f32
    %256 = vector.broadcast %cst_67 : f32 to vector<4x32xf32>
    %257 = arith.cmpf ogt, %255, %256 : vector<4x32xf32>
    %258 = arith.extui %257 : vector<4x32xi1> to vector<4x32xi32>
    %259 = arith.sitofp %258 : vector<4x32xi32> to vector<4x32xf32>
    %cst_68 = arith.constant dense<0.000000e+00> : vector<32xf32>
    %260 = vector.multi_reduction <add>, %259, %cst_68 [0] : vector<4x32xf32> to vector<32xf32>
    %261 = vector.shape_cast %260 : vector<32xf32> to vector<1x32xf32>
    %cst_69 = arith.constant 4.000000e+00 : f32
    %262 = vector.broadcast %cst_69 : f32 to vector<1x32xf32>
    %263 = arith.divf %261, %262 : vector<1x32xf32>
    %264 = vector.broadcast %263 : vector<1x32xf32> to vector<4x32xf32>
    %265 = arith.subf %259, %264 : vector<4x32xf32>
    %266 = arith.mulf %265, %265 : vector<4x32xf32>
    %cst_70 = arith.constant dense<0.000000e+00> : vector<32xf32>
    %267 = vector.multi_reduction <add>, %266, %cst_70 [0] : vector<4x32xf32> to vector<32xf32>
    %268 = vector.shape_cast %267 : vector<32xf32> to vector<1x32xf32>
    %cst_71 = arith.constant 4.000000e+00 : f32
    %269 = vector.broadcast %cst_71 : f32 to vector<1x32xf32>
    %270 = arith.divf %268, %269 : vector<1x32xf32>
    %271 = vector.broadcast %263 : vector<1x32xf32> to vector<4x32xf32>
    %272 = arith.subf %259, %271 : vector<4x32xf32>
    %273 = arith.mulf %36, %272 : vector<4x32xf32>
    %cst_72 = arith.constant 9.99999974E-6 : f32
    %274 = vector.broadcast %cst_72 : f32 to vector<1x32xf32>
    %275 = arith.addf %270, %274 : vector<1x32xf32>
    %276 = math.rsqrt %275 : vector<1x32xf32>
    %277 = vector.broadcast %276 : vector<1x32xf32> to vector<4x32xf32>
    %278 = arith.mulf %273, %277 : vector<4x32xf32>
    %279 = arith.addf %278, %39 : vector<4x32xf32>
    %280 = arith.truncf %279 : vector<4x32xf32> to vector<4x32xbf16>
    %cst_73 = arith.constant dense<0.000000e+00> : vector<4x128xf32>
    %281 = tpu.matmul %280, %27, %cst_73 {dimension_numbers = #tpu.dot_dimension_numbers<[1], [0], [0], [1], [0, 0, 1, 1], [], []>} : vector<4x32xbf16>, vector<32x128xbf16>, vector<4x128xf32> -> vector<4x128xf32>
    %282 = arith.addf %281, %224 : vector<4x128xf32>
    %283 = arith.addf %282, %33 : vector<4x128xf32>
    %284 = arith.negf %283 : vector<4x128xf32>
    %285 = math.exp %284 : vector<4x128xf32>
    %cst_74 = arith.constant 1.000000e+00 : f32
    %286 = vector.broadcast %cst_74 : f32 to vector<4x128xf32>
    %287 = arith.addf %286, %285 : vector<4x128xf32>
    %288 = arith.divf %286, %287 : vector<4x128xf32>
    %289 = math.tanh %283 : vector<4x128xf32>
    %290 = vector.extract_strided_slice %288 {offsets = [0, 0], sizes = [4, 32], strides = [1, 1]} : vector<4x128xf32> to vector<4x32xf32>
    %291 = vector.extract_strided_slice %288 {offsets = [0, 32], sizes = [4, 32], strides = [1, 1]} : vector<4x128xf32> to vector<4x32xf32>
    %292 = vector.extract_strided_slice %289 {offsets = [0, 64], sizes = [4, 32], strides = [1, 1]} : vector<4x128xf32> to vector<4x32xf32>
    %293 = vector.extract_strided_slice %288 {offsets = [0, 96], sizes = [4, 32], strides = [1, 1]} : vector<4x128xf32> to vector<4x32xf32>
    %294 = arith.mulf %291, %210 : vector<4x32xf32>
    %295 = arith.mulf %290, %292 : vector<4x32xf32>
    %296 = arith.addf %294, %295 : vector<4x32xf32>
    %297 = math.tanh %296 : vector<4x32xf32>
    %298 = arith.mulf %293, %297 : vector<4x32xf32>
    %299 = vector.broadcast %30 : f32 to vector<4x32xf32>
    %300 = arith.subf %221, %299 : vector<4x32xf32>
    %cst_75 = arith.constant 0.000000e+00 : f32
    %301 = vector.broadcast %cst_75 : f32 to vector<4x32xf32>
    %302 = arith.cmpf ogt, %300, %301 : vector<4x32xf32>
    %303 = arith.extui %302 : vector<4x32xi1> to vector<4x32xi32>
    %304 = arith.sitofp %303 : vector<4x32xi32> to vector<4x32xf32>
    %305 = vector.broadcast %30 : f32 to vector<4x32xf32>
    %306 = arith.mulf %304, %305 : vector<4x32xf32>
    %307 = arith.subf %298, %306 : vector<4x32xf32>
    %308 = arith.addf %222, %307 : vector<4x32xf32>
    %309 = arith.truncf %307 : vector<4x32xf32> to vector<4x32xbf16>
    %cst_76 = arith.constant dense<0.000000e+00> : vector<4x128xf32>
    %310 = tpu.matmul %309, %28, %cst_76 {dimension_numbers = #tpu.dot_dimension_numbers<[1], [0], [0], [1], [0, 0, 1, 1], [], []>} : vector<4x32xbf16>, vector<32x128xbf16>, vector<4x128xf32> -> vector<4x128xf32>
    %c3 = arith.constant 3 : index
    %c0_77 = arith.constant 0 : index
    %c0_78 = arith.constant 0 : index
    %311 = vector.load %arg14[%c3, %c0_77, %c0_78] : memref<6x4x128xf32, #tpu.memory_space<vmem>>, vector<1x4x128xf32>
    %312 = vector.shape_cast %311 : vector<1x4x128xf32> to vector<4x128xf32>
    %313 = arith.truncf %253 : vector<4x32xf32> to vector<4x32xbf16>
    %cst_79 = arith.constant dense<0.000000e+00> : vector<4x128xf32>
    %314 = tpu.matmul %313, %26, %cst_79 {dimension_numbers = #tpu.dot_dimension_numbers<[1], [0], [0], [1], [0, 0, 1, 1], [], []>} : vector<4x32xbf16>, vector<32x128xbf16>, vector<4x128xf32> -> vector<4x128xf32>
    %315 = arith.addf %312, %314 : vector<4x128xf32>
    %316 = arith.negf %315 : vector<4x128xf32>
    %317 = math.exp %316 : vector<4x128xf32>
    %cst_80 = arith.constant 1.000000e+00 : f32
    %318 = vector.broadcast %cst_80 : f32 to vector<4x128xf32>
    %319 = arith.addf %318, %317 : vector<4x128xf32>
    %320 = arith.divf %318, %319 : vector<4x128xf32>
    %321 = math.tanh %315 : vector<4x128xf32>
    %322 = vector.extract_strided_slice %320 {offsets = [0, 0], sizes = [4, 32], strides = [1, 1]} : vector<4x128xf32> to vector<4x32xf32>
    %323 = vector.extract_strided_slice %320 {offsets = [0, 32], sizes = [4, 32], strides = [1, 1]} : vector<4x128xf32> to vector<4x32xf32>
    %324 = vector.extract_strided_slice %321 {offsets = [0, 64], sizes = [4, 32], strides = [1, 1]} : vector<4x128xf32> to vector<4x32xf32>
    %325 = vector.extract_strided_slice %320 {offsets = [0, 96], sizes = [4, 32], strides = [1, 1]} : vector<4x128xf32> to vector<4x32xf32>
    %326 = arith.mulf %323, %242 : vector<4x32xf32>
    %327 = arith.mulf %322, %324 : vector<4x32xf32>
    %328 = arith.addf %326, %327 : vector<4x32xf32>
    %329 = math.tanh %328 : vector<4x32xf32>
    %330 = arith.mulf %325, %329 : vector<4x32xf32>
    %331 = vector.broadcast %29 : f32 to vector<4x32xf32>
    %332 = arith.subf %253, %331 : vector<4x32xf32>
    %cst_81 = arith.constant 0.000000e+00 : f32
    %333 = vector.broadcast %cst_81 : f32 to vector<4x32xf32>
    %334 = arith.cmpf ogt, %332, %333 : vector<4x32xf32>
    %335 = arith.extui %334 : vector<4x32xi1> to vector<4x32xi32>
    %336 = arith.sitofp %335 : vector<4x32xi32> to vector<4x32xf32>
    %337 = vector.broadcast %29 : f32 to vector<4x32xf32>
    %338 = arith.mulf %336, %337 : vector<4x32xf32>
    %339 = arith.subf %330, %338 : vector<4x32xf32>
    %340 = vector.broadcast %29 : f32 to vector<4x32xf32>
    %341 = arith.subf %339, %340 : vector<4x32xf32>
    %cst_82 = arith.constant 0.000000e+00 : f32
    %342 = vector.broadcast %cst_82 : f32 to vector<4x32xf32>
    %343 = arith.cmpf ogt, %341, %342 : vector<4x32xf32>
    %344 = arith.extui %343 : vector<4x32xi1> to vector<4x32xi32>
    %345 = arith.sitofp %344 : vector<4x32xi32> to vector<4x32xf32>
    %cst_83 = arith.constant dense<0.000000e+00> : vector<32xf32>
    %346 = vector.multi_reduction <add>, %345, %cst_83 [0] : vector<4x32xf32> to vector<32xf32>
    %347 = vector.shape_cast %346 : vector<32xf32> to vector<1x32xf32>
    %cst_84 = arith.constant 4.000000e+00 : f32
    %348 = vector.broadcast %cst_84 : f32 to vector<1x32xf32>
    %349 = arith.divf %347, %348 : vector<1x32xf32>
    %350 = vector.broadcast %349 : vector<1x32xf32> to vector<4x32xf32>
    %351 = arith.subf %345, %350 : vector<4x32xf32>
    %352 = arith.mulf %351, %351 : vector<4x32xf32>
    %cst_85 = arith.constant dense<0.000000e+00> : vector<32xf32>
    %353 = vector.multi_reduction <add>, %352, %cst_85 [0] : vector<4x32xf32> to vector<32xf32>
    %354 = vector.shape_cast %353 : vector<32xf32> to vector<1x32xf32>
    %cst_86 = arith.constant 4.000000e+00 : f32
    %355 = vector.broadcast %cst_86 : f32 to vector<1x32xf32>
    %356 = arith.divf %354, %355 : vector<1x32xf32>
    %357 = vector.broadcast %349 : vector<1x32xf32> to vector<4x32xf32>
    %358 = arith.subf %345, %357 : vector<4x32xf32>
    %359 = arith.mulf %36, %358 : vector<4x32xf32>
    %cst_87 = arith.constant 9.99999974E-6 : f32
    %360 = vector.broadcast %cst_87 : f32 to vector<1x32xf32>
    %361 = arith.addf %356, %360 : vector<1x32xf32>
    %362 = math.rsqrt %361 : vector<1x32xf32>
    %363 = vector.broadcast %362 : vector<1x32xf32> to vector<4x32xf32>
    %364 = arith.mulf %359, %363 : vector<4x32xf32>
    %365 = arith.addf %364, %39 : vector<4x32xf32>
    %366 = arith.truncf %365 : vector<4x32xf32> to vector<4x32xbf16>
    %cst_88 = arith.constant dense<0.000000e+00> : vector<4x128xf32>
    %367 = tpu.matmul %366, %27, %cst_88 {dimension_numbers = #tpu.dot_dimension_numbers<[1], [0], [0], [1], [0, 0, 1, 1], [], []>} : vector<4x32xbf16>, vector<32x128xbf16>, vector<4x128xf32> -> vector<4x128xf32>
    %368 = arith.addf %367, %310 : vector<4x128xf32>
    %369 = arith.addf %368, %33 : vector<4x128xf32>
    %370 = arith.negf %369 : vector<4x128xf32>
    %371 = math.exp %370 : vector<4x128xf32>
    %cst_89 = arith.constant 1.000000e+00 : f32
    %372 = vector.broadcast %cst_89 : f32 to vector<4x128xf32>
    %373 = arith.addf %372, %371 : vector<4x128xf32>
    %374 = arith.divf %372, %373 : vector<4x128xf32>
    %375 = math.tanh %369 : vector<4x128xf32>
    %376 = vector.extract_strided_slice %374 {offsets = [0, 0], sizes = [4, 32], strides = [1, 1]} : vector<4x128xf32> to vector<4x32xf32>
    %377 = vector.extract_strided_slice %374 {offsets = [0, 32], sizes = [4, 32], strides = [1, 1]} : vector<4x128xf32> to vector<4x32xf32>
    %378 = vector.extract_strided_slice %375 {offsets = [0, 64], sizes = [4, 32], strides = [1, 1]} : vector<4x128xf32> to vector<4x32xf32>
    %379 = vector.extract_strided_slice %374 {offsets = [0, 96], sizes = [4, 32], strides = [1, 1]} : vector<4x128xf32> to vector<4x32xf32>
    %380 = arith.mulf %377, %296 : vector<4x32xf32>
    %381 = arith.mulf %376, %378 : vector<4x32xf32>
    %382 = arith.addf %380, %381 : vector<4x32xf32>
    %383 = math.tanh %382 : vector<4x32xf32>
    %384 = arith.mulf %379, %383 : vector<4x32xf32>
    %385 = vector.broadcast %30 : f32 to vector<4x32xf32>
    %386 = arith.subf %307, %385 : vector<4x32xf32>
    %cst_90 = arith.constant 0.000000e+00 : f32
    %387 = vector.broadcast %cst_90 : f32 to vector<4x32xf32>
    %388 = arith.cmpf ogt, %386, %387 : vector<4x32xf32>
    %389 = arith.extui %388 : vector<4x32xi1> to vector<4x32xi32>
    %390 = arith.sitofp %389 : vector<4x32xi32> to vector<4x32xf32>
    %391 = vector.broadcast %30 : f32 to vector<4x32xf32>
    %392 = arith.mulf %390, %391 : vector<4x32xf32>
    %393 = arith.subf %384, %392 : vector<4x32xf32>
    %394 = arith.addf %308, %393 : vector<4x32xf32>
    %395 = arith.truncf %393 : vector<4x32xf32> to vector<4x32xbf16>
    %cst_91 = arith.constant dense<0.000000e+00> : vector<4x128xf32>
    %396 = tpu.matmul %395, %28, %cst_91 {dimension_numbers = #tpu.dot_dimension_numbers<[1], [0], [0], [1], [0, 0, 1, 1], [], []>} : vector<4x32xbf16>, vector<32x128xbf16>, vector<4x128xf32> -> vector<4x128xf32>
    %c4 = arith.constant 4 : index
    %c0_92 = arith.constant 0 : index
    %c0_93 = arith.constant 0 : index
    %397 = vector.load %arg14[%c4, %c0_92, %c0_93] : memref<6x4x128xf32, #tpu.memory_space<vmem>>, vector<1x4x128xf32>
    %398 = vector.shape_cast %397 : vector<1x4x128xf32> to vector<4x128xf32>
    %399 = arith.truncf %339 : vector<4x32xf32> to vector<4x32xbf16>
    %cst_94 = arith.constant dense<0.000000e+00> : vector<4x128xf32>
    %400 = tpu.matmul %399, %26, %cst_94 {dimension_numbers = #tpu.dot_dimension_numbers<[1], [0], [0], [1], [0, 0, 1, 1], [], []>} : vector<4x32xbf16>, vector<32x128xbf16>, vector<4x128xf32> -> vector<4x128xf32>
    %401 = arith.addf %398, %400 : vector<4x128xf32>
    %402 = arith.negf %401 : vector<4x128xf32>
    %403 = math.exp %402 : vector<4x128xf32>
    %cst_95 = arith.constant 1.000000e+00 : f32
    %404 = vector.broadcast %cst_95 : f32 to vector<4x128xf32>
    %405 = arith.addf %404, %403 : vector<4x128xf32>
    %406 = arith.divf %404, %405 : vector<4x128xf32>
    %407 = math.tanh %401 : vector<4x128xf32>
    %408 = vector.extract_strided_slice %406 {offsets = [0, 0], sizes = [4, 32], strides = [1, 1]} : vector<4x128xf32> to vector<4x32xf32>
    %409 = vector.extract_strided_slice %406 {offsets = [0, 32], sizes = [4, 32], strides = [1, 1]} : vector<4x128xf32> to vector<4x32xf32>
    %410 = vector.extract_strided_slice %407 {offsets = [0, 64], sizes = [4, 32], strides = [1, 1]} : vector<4x128xf32> to vector<4x32xf32>
    %411 = vector.extract_strided_slice %406 {offsets = [0, 96], sizes = [4, 32], strides = [1, 1]} : vector<4x128xf32> to vector<4x32xf32>
    %412 = arith.mulf %409, %328 : vector<4x32xf32>
    %413 = arith.mulf %408, %410 : vector<4x32xf32>
    %414 = arith.addf %412, %413 : vector<4x32xf32>
    %415 = math.tanh %414 : vector<4x32xf32>
    %416 = arith.mulf %411, %415 : vector<4x32xf32>
    %417 = vector.broadcast %29 : f32 to vector<4x32xf32>
    %418 = arith.subf %339, %417 : vector<4x32xf32>
    %cst_96 = arith.constant 0.000000e+00 : f32
    %419 = vector.broadcast %cst_96 : f32 to vector<4x32xf32>
    %420 = arith.cmpf ogt, %418, %419 : vector<4x32xf32>
    %421 = arith.extui %420 : vector<4x32xi1> to vector<4x32xi32>
    %422 = arith.sitofp %421 : vector<4x32xi32> to vector<4x32xf32>
    %423 = vector.broadcast %29 : f32 to vector<4x32xf32>
    %424 = arith.mulf %422, %423 : vector<4x32xf32>
    %425 = arith.subf %416, %424 : vector<4x32xf32>
    %426 = vector.broadcast %29 : f32 to vector<4x32xf32>
    %427 = arith.subf %425, %426 : vector<4x32xf32>
    %cst_97 = arith.constant 0.000000e+00 : f32
    %428 = vector.broadcast %cst_97 : f32 to vector<4x32xf32>
    %429 = arith.cmpf ogt, %427, %428 : vector<4x32xf32>
    %430 = arith.extui %429 : vector<4x32xi1> to vector<4x32xi32>
    %431 = arith.sitofp %430 : vector<4x32xi32> to vector<4x32xf32>
    %cst_98 = arith.constant dense<0.000000e+00> : vector<32xf32>
    %432 = vector.multi_reduction <add>, %431, %cst_98 [0] : vector<4x32xf32> to vector<32xf32>
    %433 = vector.shape_cast %432 : vector<32xf32> to vector<1x32xf32>
    %cst_99 = arith.constant 4.000000e+00 : f32
    %434 = vector.broadcast %cst_99 : f32 to vector<1x32xf32>
    %435 = arith.divf %433, %434 : vector<1x32xf32>
    %436 = vector.broadcast %435 : vector<1x32xf32> to vector<4x32xf32>
    %437 = arith.subf %431, %436 : vector<4x32xf32>
    %438 = arith.mulf %437, %437 : vector<4x32xf32>
    %cst_100 = arith.constant dense<0.000000e+00> : vector<32xf32>
    %439 = vector.multi_reduction <add>, %438, %cst_100 [0] : vector<4x32xf32> to vector<32xf32>
    %440 = vector.shape_cast %439 : vector<32xf32> to vector<1x32xf32>
    %cst_101 = arith.constant 4.000000e+00 : f32
    %441 = vector.broadcast %cst_101 : f32 to vector<1x32xf32>
    %442 = arith.divf %440, %441 : vector<1x32xf32>
    %443 = vector.broadcast %435 : vector<1x32xf32> to vector<4x32xf32>
    %444 = arith.subf %431, %443 : vector<4x32xf32>
    %445 = arith.mulf %36, %444 : vector<4x32xf32>
    %cst_102 = arith.constant 9.99999974E-6 : f32
    %446 = vector.broadcast %cst_102 : f32 to vector<1x32xf32>
    %447 = arith.addf %442, %446 : vector<1x32xf32>
    %448 = math.rsqrt %447 : vector<1x32xf32>
    %449 = vector.broadcast %448 : vector<1x32xf32> to vector<4x32xf32>
    %450 = arith.mulf %445, %449 : vector<4x32xf32>
    %451 = arith.addf %450, %39 : vector<4x32xf32>
    %452 = arith.truncf %451 : vector<4x32xf32> to vector<4x32xbf16>
    %cst_103 = arith.constant dense<0.000000e+00> : vector<4x128xf32>
    %453 = tpu.matmul %452, %27, %cst_103 {dimension_numbers = #tpu.dot_dimension_numbers<[1], [0], [0], [1], [0, 0, 1, 1], [], []>} : vector<4x32xbf16>, vector<32x128xbf16>, vector<4x128xf32> -> vector<4x128xf32>
    %454 = arith.addf %453, %396 : vector<4x128xf32>
    %455 = arith.addf %454, %33 : vector<4x128xf32>
    %456 = arith.negf %455 : vector<4x128xf32>
    %457 = math.exp %456 : vector<4x128xf32>
    %cst_104 = arith.constant 1.000000e+00 : f32
    %458 = vector.broadcast %cst_104 : f32 to vector<4x128xf32>
    %459 = arith.addf %458, %457 : vector<4x128xf32>
    %460 = arith.divf %458, %459 : vector<4x128xf32>
    %461 = math.tanh %455 : vector<4x128xf32>
    %462 = vector.extract_strided_slice %460 {offsets = [0, 0], sizes = [4, 32], strides = [1, 1]} : vector<4x128xf32> to vector<4x32xf32>
    %463 = vector.extract_strided_slice %460 {offsets = [0, 32], sizes = [4, 32], strides = [1, 1]} : vector<4x128xf32> to vector<4x32xf32>
    %464 = vector.extract_strided_slice %461 {offsets = [0, 64], sizes = [4, 32], strides = [1, 1]} : vector<4x128xf32> to vector<4x32xf32>
    %465 = vector.extract_strided_slice %460 {offsets = [0, 96], sizes = [4, 32], strides = [1, 1]} : vector<4x128xf32> to vector<4x32xf32>
    %466 = arith.mulf %463, %382 : vector<4x32xf32>
    %467 = arith.mulf %462, %464 : vector<4x32xf32>
    %468 = arith.addf %466, %467 : vector<4x32xf32>
    %469 = math.tanh %468 : vector<4x32xf32>
    %470 = arith.mulf %465, %469 : vector<4x32xf32>
    %471 = vector.broadcast %30 : f32 to vector<4x32xf32>
    %472 = arith.subf %393, %471 : vector<4x32xf32>
    %cst_105 = arith.constant 0.000000e+00 : f32
    %473 = vector.broadcast %cst_105 : f32 to vector<4x32xf32>
    %474 = arith.cmpf ogt, %472, %473 : vector<4x32xf32>
    %475 = arith.extui %474 : vector<4x32xi1> to vector<4x32xi32>
    %476 = arith.sitofp %475 : vector<4x32xi32> to vector<4x32xf32>
    %477 = vector.broadcast %30 : f32 to vector<4x32xf32>
    %478 = arith.mulf %476, %477 : vector<4x32xf32>
    %479 = arith.subf %470, %478 : vector<4x32xf32>
    %480 = arith.addf %394, %479 : vector<4x32xf32>
    %481 = arith.truncf %479 : vector<4x32xf32> to vector<4x32xbf16>
    %cst_106 = arith.constant dense<0.000000e+00> : vector<4x128xf32>
    %482 = tpu.matmul %481, %28, %cst_106 {dimension_numbers = #tpu.dot_dimension_numbers<[1], [0], [0], [1], [0, 0, 1, 1], [], []>} : vector<4x32xbf16>, vector<32x128xbf16>, vector<4x128xf32> -> vector<4x128xf32>
    %c5 = arith.constant 5 : index
    %c0_107 = arith.constant 0 : index
    %c0_108 = arith.constant 0 : index
    %483 = vector.load %arg14[%c5, %c0_107, %c0_108] : memref<6x4x128xf32, #tpu.memory_space<vmem>>, vector<1x4x128xf32>
    %484 = vector.shape_cast %483 : vector<1x4x128xf32> to vector<4x128xf32>
    %485 = arith.truncf %425 : vector<4x32xf32> to vector<4x32xbf16>
    %cst_109 = arith.constant dense<0.000000e+00> : vector<4x128xf32>
    %486 = tpu.matmul %485, %26, %cst_109 {dimension_numbers = #tpu.dot_dimension_numbers<[1], [0], [0], [1], [0, 0, 1, 1], [], []>} : vector<4x32xbf16>, vector<32x128xbf16>, vector<4x128xf32> -> vector<4x128xf32>
    %487 = arith.addf %484, %486 : vector<4x128xf32>
    %488 = arith.negf %487 : vector<4x128xf32>
    %489 = math.exp %488 : vector<4x128xf32>
    %cst_110 = arith.constant 1.000000e+00 : f32
    %490 = vector.broadcast %cst_110 : f32 to vector<4x128xf32>
    %491 = arith.addf %490, %489 : vector<4x128xf32>
    %492 = arith.divf %490, %491 : vector<4x128xf32>
    %493 = math.tanh %487 : vector<4x128xf32>
    %494 = vector.extract_strided_slice %492 {offsets = [0, 0], sizes = [4, 32], strides = [1, 1]} : vector<4x128xf32> to vector<4x32xf32>
    %495 = vector.extract_strided_slice %492 {offsets = [0, 32], sizes = [4, 32], strides = [1, 1]} : vector<4x128xf32> to vector<4x32xf32>
    %496 = vector.extract_strided_slice %493 {offsets = [0, 64], sizes = [4, 32], strides = [1, 1]} : vector<4x128xf32> to vector<4x32xf32>
    %497 = vector.extract_strided_slice %492 {offsets = [0, 96], sizes = [4, 32], strides = [1, 1]} : vector<4x128xf32> to vector<4x32xf32>
    %498 = arith.mulf %495, %414 : vector<4x32xf32>
    %499 = arith.mulf %494, %496 : vector<4x32xf32>
    %500 = arith.addf %498, %499 : vector<4x32xf32>
    %501 = math.tanh %500 : vector<4x32xf32>
    %502 = arith.mulf %497, %501 : vector<4x32xf32>
    %503 = vector.broadcast %29 : f32 to vector<4x32xf32>
    %504 = arith.subf %425, %503 : vector<4x32xf32>
    %cst_111 = arith.constant 0.000000e+00 : f32
    %505 = vector.broadcast %cst_111 : f32 to vector<4x32xf32>
    %506 = arith.cmpf ogt, %504, %505 : vector<4x32xf32>
    %507 = arith.extui %506 : vector<4x32xi1> to vector<4x32xi32>
    %508 = arith.sitofp %507 : vector<4x32xi32> to vector<4x32xf32>
    %509 = vector.broadcast %29 : f32 to vector<4x32xf32>
    %510 = arith.mulf %508, %509 : vector<4x32xf32>
    %511 = arith.subf %502, %510 : vector<4x32xf32>
    %512 = vector.broadcast %29 : f32 to vector<4x32xf32>
    %513 = arith.subf %511, %512 : vector<4x32xf32>
    %cst_112 = arith.constant 0.000000e+00 : f32
    %514 = vector.broadcast %cst_112 : f32 to vector<4x32xf32>
    %515 = arith.cmpf ogt, %513, %514 : vector<4x32xf32>
    %516 = arith.extui %515 : vector<4x32xi1> to vector<4x32xi32>
    %517 = arith.sitofp %516 : vector<4x32xi32> to vector<4x32xf32>
    %cst_113 = arith.constant dense<0.000000e+00> : vector<32xf32>
    %518 = vector.multi_reduction <add>, %517, %cst_113 [0] : vector<4x32xf32> to vector<32xf32>
    %519 = vector.shape_cast %518 : vector<32xf32> to vector<1x32xf32>
    %cst_114 = arith.constant 4.000000e+00 : f32
    %520 = vector.broadcast %cst_114 : f32 to vector<1x32xf32>
    %521 = arith.divf %519, %520 : vector<1x32xf32>
    %522 = vector.broadcast %521 : vector<1x32xf32> to vector<4x32xf32>
    %523 = arith.subf %517, %522 : vector<4x32xf32>
    %524 = arith.mulf %523, %523 : vector<4x32xf32>
    %cst_115 = arith.constant dense<0.000000e+00> : vector<32xf32>
    %525 = vector.multi_reduction <add>, %524, %cst_115 [0] : vector<4x32xf32> to vector<32xf32>
    %526 = vector.shape_cast %525 : vector<32xf32> to vector<1x32xf32>
    %cst_116 = arith.constant 4.000000e+00 : f32
    %527 = vector.broadcast %cst_116 : f32 to vector<1x32xf32>
    %528 = arith.divf %526, %527 : vector<1x32xf32>
    %529 = vector.broadcast %521 : vector<1x32xf32> to vector<4x32xf32>
    %530 = arith.subf %517, %529 : vector<4x32xf32>
    %531 = arith.mulf %36, %530 : vector<4x32xf32>
    %cst_117 = arith.constant 9.99999974E-6 : f32
    %532 = vector.broadcast %cst_117 : f32 to vector<1x32xf32>
    %533 = arith.addf %528, %532 : vector<1x32xf32>
    %534 = math.rsqrt %533 : vector<1x32xf32>
    %535 = vector.broadcast %534 : vector<1x32xf32> to vector<4x32xf32>
    %536 = arith.mulf %531, %535 : vector<4x32xf32>
    %537 = arith.addf %536, %39 : vector<4x32xf32>
    %538 = arith.truncf %537 : vector<4x32xf32> to vector<4x32xbf16>
    %cst_118 = arith.constant dense<0.000000e+00> : vector<4x128xf32>
    %539 = tpu.matmul %538, %27, %cst_118 {dimension_numbers = #tpu.dot_dimension_numbers<[1], [0], [0], [1], [0, 0, 1, 1], [], []>} : vector<4x32xbf16>, vector<32x128xbf16>, vector<4x128xf32> -> vector<4x128xf32>
    %540 = arith.addf %539, %482 : vector<4x128xf32>
    %541 = arith.addf %540, %33 : vector<4x128xf32>
    %542 = arith.negf %541 : vector<4x128xf32>
    %543 = math.exp %542 : vector<4x128xf32>
    %cst_119 = arith.constant 1.000000e+00 : f32
    %544 = vector.broadcast %cst_119 : f32 to vector<4x128xf32>
    %545 = arith.addf %544, %543 : vector<4x128xf32>
    %546 = arith.divf %544, %545 : vector<4x128xf32>
    %547 = math.tanh %541 : vector<4x128xf32>
    %548 = vector.extract_strided_slice %546 {offsets = [0, 0], sizes = [4, 32], strides = [1, 1]} : vector<4x128xf32> to vector<4x32xf32>
    %549 = vector.extract_strided_slice %546 {offsets = [0, 32], sizes = [4, 32], strides = [1, 1]} : vector<4x128xf32> to vector<4x32xf32>
    %550 = vector.extract_strided_slice %547 {offsets = [0, 64], sizes = [4, 32], strides = [1, 1]} : vector<4x128xf32> to vector<4x32xf32>
    %551 = vector.extract_strided_slice %546 {offsets = [0, 96], sizes = [4, 32], strides = [1, 1]} : vector<4x128xf32> to vector<4x32xf32>
    %552 = arith.mulf %549, %468 : vector<4x32xf32>
    %553 = arith.mulf %548, %550 : vector<4x32xf32>
    %554 = arith.addf %552, %553 : vector<4x32xf32>
    %555 = math.tanh %554 : vector<4x32xf32>
    %556 = arith.mulf %551, %555 : vector<4x32xf32>
    %557 = vector.broadcast %30 : f32 to vector<4x32xf32>
    %558 = arith.subf %479, %557 : vector<4x32xf32>
    %cst_120 = arith.constant 0.000000e+00 : f32
    %559 = vector.broadcast %cst_120 : f32 to vector<4x32xf32>
    %560 = arith.cmpf ogt, %558, %559 : vector<4x32xf32>
    %561 = arith.extui %560 : vector<4x32xi1> to vector<4x32xi32>
    %562 = arith.sitofp %561 : vector<4x32xi32> to vector<4x32xf32>
    %563 = vector.broadcast %30 : f32 to vector<4x32xf32>
    %564 = arith.mulf %562, %563 : vector<4x32xf32>
    %565 = arith.subf %556, %564 : vector<4x32xf32>
    %566 = arith.addf %480, %565 : vector<4x32xf32>
    %cst_121 = arith.constant 0.166666672 : f32
    %567 = vector.broadcast %cst_121 : f32 to vector<4x32xf32>
    %568 = arith.mulf %566, %567 : vector<4x32xf32>
    %569 = arith.truncf %568 : vector<4x32xf32> to vector<4x32xbf16>
    %c0_122 = arith.constant 0 : index
    %c0_123 = arith.constant 0 : index
    %570 = vector.load %arg11[%c0_122, %c0_123] : memref<32x128xbf16, #tpu.memory_space<vmem>>, vector<32x128xbf16>
    %cst_124 = arith.constant dense<0.000000e+00> : vector<4x128xf32>
    %571 = tpu.matmul %569, %570, %cst_124 {dimension_numbers = #tpu.dot_dimension_numbers<[1], [0], [0], [1], [0, 0, 1, 1], [], []>} : vector<4x32xbf16>, vector<32x128xbf16>, vector<4x128xf32> -> vector<4x128xf32>
    %c0_125 = arith.constant 0 : index
    %c0_126 = arith.constant 0 : index
    %572 = vector.load %arg12[%c0_125, %c0_126] : memref<1x128xf32, #tpu.memory_space<vmem>>, vector<1x128xf32>
    %573 = vector.broadcast %572 : vector<1x128xf32> to vector<4x128xf32>
    %574 = arith.addf %571, %573 : vector<4x128xf32>
    %c0_127 = arith.constant 0 : index
    %c0_128 = arith.constant 0 : index
    %575 = vector.load %arg13[%c0_127, %c0_128] : memref<4x128xf32, #tpu.memory_space<vmem>>, vector<4x128xf32>
    tpu.vector_store %arg13[%c0_127, %c0_128], %574 {strides = array<i32>} : memref<4x128xf32, #tpu.memory_space<vmem>>, vector<4x128xf32>,
    return
  }
}

</mosaic_0001>

<bundles_post_ra>
// kernel: tpu_custom_call.1
= control target key start
LH: loop header
LB: loop body
LE: loop exit
PB: predicated region body
PF: predicated region fallthrough
CT: control target
= control target key end

     0   :  { %20 = vsyncpa [#allocation6], 0  ;;  %s3585_s0 = inlined_call_operand.hbm [shape: f32[6,4,14], index: 0, kind: input, shape index: {}]   ;;  %s3586_s1 = inlined_call_operand.hbm [shape: bf16[14,128], index: 1, kind: input, shape index: {}]   ;;  %s3587_s2 = inlined_call_operand.hbm [shape: bf16[32,128], index: 2, kind: input, shape index: {}]   ;;  %s3588_s3 = inlined_call_operand.hbm [shape: f32[1,128], index: 3, kind: input, shape index: {}]   ;;  %s3589_s4 = inlined_call_operand.<no memory space> [shape: f32[1], index: 4, kind: input, shape index: {}]   ;;  %s3590_s5 = inlined_call_operand.hbm [shape: f32[1,32], index: 5, kind: input, shape index: {}]   ;;  %s3591_s6 = inlined_call_operand.hbm [shape: f32[1,32], index: 6, kind: input, shape index: {}]   ;;  %s3592_s7 = inlined_call_operand.hbm [shape: bf16[32,128], index: 7, kind: input, shape index: {}]   ;;  %s3593_s8 = inlined_call_operand.vmem [shape: bf16[32,128], index: 8, kind: input, shape index: {}]   ;;  %s3594_s9 = inlined_call_operand.vmem [shape: f32[1,128], index: 9, kind: input, shape index: {}]   ;;  %s3595_s10 = inlined_call_operand.<no memory space> [shape: f32[1], index: 10, kind: input, shape index: {}]   ;;  %s3596_s11 = inlined_call_operand.hbm [shape: bf16[32,128], index: 11, kind: input, shape index: {}]   ;;  %s3597_s12 = inlined_call_operand.vmem [shape: f32[1,128], index: 12, kind: input, shape index: {}]   ;;  %s3598_s13 = inlined_call_operand.hbm [shape: f32[4,128], index: 13, kind: output, shape index: {}]  }
   0x1   :  { %21 = vsyncpa [#allocation9], 0 }
   0x2   :  { %22 = vsyncpa [#allocation12], 0 }
   0x3   :  { %23 = vsyncpa [#allocation15], 0 }
   0x4   :  { %24 = vsyncpa [#allocation18], 0 }
   0x5   :  { %25 = vsyncpa [#allocation7], 0  ;;  %s2932_s25 = smov [#allocation8]   ;;  %s2933_s27 = smov [#allocation11]  }
   0x6   :  { %s43_s26 = sshll.u32 %s2932_s25, 4  ;;  %s68_s28 = sshll.u32 %s2933_s27, 4  ;;  %s44_s26 = int_to_ptr.vmem [resolvable:$true] %s43_s26  ;;  %s69_s28 = int_to_ptr.vmem [resolvable:$true] %s68_s28 }
   0x7   :  { %s2748_s29 = scalar_lea.vmem %s44_s26, 128  ;;  %p2753_p1 = scmp.lt.s32.totalorder %s44_s26, %s44_s26 }
   0x8   :  { %p2749_p0 = scmp.ne.s32.totalorder %s44_s26, %s2748_s29  ;;  %p2754_p2 = scmp.lt.s32.totalorder %s2748_s29, %s2748_s29 }
   0xa   :  { %p2755_p3 = por %p2754_p2, %p2753_p1 }
   0xc   :  { %p2756_p4 = pnand %p2755_p3, %p2749_p0 }
   0xe   :  { %2759 = shalt.err (!%p2756_p4)
}
   0xf   :  { %s2934_s30 = smov 64   ;;  %s2935_s14 = smov 4  }
  0x10   :  { %49 = dma.hbm_to_vmem [thread:$0]  %s3586_s1, 128, %s44_s26, [#allocation9], %s2934_s30, %s2934_s30, %s2935_s14  }
  0x11   :  { %s2768_s17 = scalar_lea.vmem %s69_s28, 16  ;;  %s2772_s18 = scalar_lea.vmem %s69_s28, 32 }
  0x12   :  { %p2769_p5 = scmp.ne.s32.totalorder %s69_s28, %s2768_s17  ;;  %p2773_p6 = scmp.lt.s32.totalorder %s69_s28, %s69_s28 }
  0x13   :  { %p2774_p7 = scmp.lt.s32.totalorder %s2772_s18, %s2768_s17 }
  0x15   :  { %p2775_p8 = por %p2774_p7, %p2773_p6 }
  0x17   :  { %p2776_p9 = pnand %p2775_p8, %p2769_p5 }
  0x19   :  { %2779 = shalt.err (!%p2776_p9)
}
  0x1a   :  { %71 = dma.hbm_to_vmem [thread:$0]  %s3588_s3, 16, %s69_s28, [#allocation12]  }
  0x1b   :  { %s2936_s21 = smov [#allocation14]   ;;  %s2937_s23 = smov [#allocation5]  }
  0x1c   :  { %s90_s22 = sshll.u32 %s2936_s21, 4  ;;  %s31_s24 = sshll.u32 %s2937_s23, 4  ;;  %s91_s22 = int_to_ptr.vmem [resolvable:$true] %s90_s22  ;;  %s32_s24 = int_to_ptr.vmem [resolvable:$true] %s31_s24 }
  0x1d   :  { %s2788_s25 = scalar_lea.vmem %s91_s22, 16  ;;  %s2792_s1 = scalar_lea.vmem %s91_s22, 32 }
  0x1e   :  { %p2789_p10 = scmp.ne.s32.totalorder %s91_s22, %s2788_s25  ;;  %p2793_p11 = scmp.lt.s32.totalorder %s91_s22, %s91_s22 }
  0x1f   :  { %p2794_p12 = scmp.lt.s32.totalorder %s2792_s1, %s2788_s25 }
  0x21   :  { %p2795_p13 = por %p2794_p12, %p2793_p11 }
  0x23   :  { %p2796_p0 = pnand %p2795_p13, %p2789_p10 }
  0x25   :  { %2799 = shalt.err (!%p2796_p0)
}
  0x26   :  { %93 = dma.hbm_to_vmem [thread:$0]  %s3591_s6, 16, %s91_s22, [#allocation15]  }
  0x27   :  { %s2808_s29 = scalar_lea.vmem %s32_s24, 384  ;;  %p2813_p2 = scmp.lt.s32.totalorder %s32_s24, %s32_s24 }
  0x28   :  { %p2809_p1 = scmp.ne.s32.totalorder %s32_s24, %s2808_s29  ;;  %p2814_p3 = scmp.lt.s32.totalorder %s2808_s29, %s2808_s29 }
  0x2a   :  { %p2815_p4 = por %p2814_p3, %p2813_p2 }
  0x2c   :  { %p2816_p5 = pnand %p2815_p4, %p2809_p1 }
  0x2e   :  { %2819 = shalt.err (!%p2816_p5)
}
  0x2f   :  { %37 = dma.hbm_to_vmem [thread:$0]  %s3585_s0, 384, %s32_s24, [#allocation6], %s2934_s30, %s2934_s30, %s2935_s14  }
  0x30   :  { %s2938_s15 = smov [#allocation10]   ;;  %s2939_s17 = smov [#allocation13]  }
  0x31   :  { %s55_s16 = sshll.u32 %s2938_s15, 4  ;;  %s80_s18 = sshll.u32 %s2939_s17, 4  ;;  %s56_s16 = int_to_ptr.vmem [resolvable:$true] %s55_s16  ;;  %s81_s18 = int_to_ptr.vmem [resolvable:$true] %s80_s18 }
  0x32   :  { %s2828_s6 = scalar_lea.vmem %s56_s16, 256  ;;  %p2833_p7 = scmp.lt.s32.totalorder %s56_s16, %s56_s16 }
  0x33   :  { %p2829_p6 = scmp.ne.s32.totalorder %s56_s16, %s2828_s6  ;;  %p2834_p8 = scmp.lt.s32.totalorder %s2828_s6, %s2828_s6 }
  0x35   :  { %p2835_p9 = por %p2834_p8, %p2833_p7 }
  0x37   :  { %p2836_p10 = pnand %p2835_p9, %p2829_p6 }
  0x39   :  { %2839 = shalt.err (!%p2836_p10)
}
  0x3a   :  { %61 = dma.hbm_to_vmem [thread:$0]  %s3587_s2, 256, %s56_s16, [#allocation9], %s2934_s30, %s2934_s30, %s2935_s14  }
  0x3b   :  { %s2848_s0 = scalar_lea.vmem %s81_s18, 16  ;;  %s2852_s21 = scalar_lea.vmem %s81_s18, 32 }
  0x3c   :  { %p2849_p11 = scmp.ne.s32.totalorder %s81_s18, %s2848_s0  ;;  %p2853_p12 = scmp.lt.s32.totalorder %s81_s18, %s81_s18 }
  0x3d   :  { %p2854_p13 = scmp.lt.s32.totalorder %s2852_s21, %s2848_s0 }
  0x3f   :  { %p2855_p0 = por %p2854_p13, %p2853_p12 }
  0x41   :  { %p2856_p1 = pnand %p2855_p0, %p2849_p11 }
  0x43   :  { %2859 = shalt.err (!%p2856_p1)
}
  0x44   :  { %83 = dma.hbm_to_vmem [thread:$0]  %s3590_s5, 16, %s81_s18, [#allocation12]  }
  0x45   :  { %s2940_s24 = smov [#allocation16]   ;;  %s2941_s1 = smov [#allocation17]  }
  0x46   :  { %s99_s25 = sshll.u32 %s2940_s24, 4  ;;  %s117_s26 = sshll.u32 %s2941_s1, 4  ;;  %s100_s25 = int_to_ptr.vmem [resolvable:$true] %s99_s25  ;;  %s118_s26 = int_to_ptr.vmem [resolvable:$true] %s117_s26 }
  0x47   :  { %s2868_s27 = scalar_lea.vmem %s100_s25, 256  ;;  %p2873_p3 = scmp.lt.s32.totalorder %s100_s25, %s100_s25 }
  0x48   :  { %p2869_p2 = scmp.ne.s32.totalorder %s100_s25, %s2868_s27  ;;  %p2874_p4 = scmp.lt.s32.totalorder %s2868_s27, %s2868_s27 }
  0x4a   :  { %p2875_p5 = por %p2874_p4, %p2873_p3 }
  0x4c   :  { %p2876_p6 = pnand %p2875_p5, %p2869_p2 }
  0x4e   :  { %2879 = shalt.err (!%p2876_p6)
}
  0x4f   :  { %105 = dma.hbm_to_vmem [thread:$0]  %s3592_s7, 256, %s100_s25, [#allocation15], %s2934_s30, %s2934_s30, %s2935_s14  }
  0x50   :  { %s2888_s5 = scalar_lea.vmem %s118_s26, 256  ;;  %p2893_p8 = scmp.lt.s32.totalorder %s118_s26, %s118_s26 }
  0x51   :  { %p2889_p7 = scmp.ne.s32.totalorder %s118_s26, %s2888_s5  ;;  %p2894_p9 = scmp.lt.s32.totalorder %s2888_s5, %s2888_s5 }
  0x53   :  { %p2895_p10 = por %p2894_p9, %p2893_p8 }
  0x55   :  { %p2896_p11 = pnand %p2895_p10, %p2889_p7 }
  0x57   :  { %2899 = shalt.err (!%p2896_p11)
}
  0x58   :  { %123 = dma.hbm_to_vmem [thread:$0]  %s3596_s11, 256, %s118_s26, [#allocation18], %s2934_s30, %s2934_s30, %s2935_s14  }
  0x59   :  { %2920 = dma.done.wait [#allocation6], 384  }
  0x5a   :  { %2921 = vsyncadd [#allocation6], 4294966912 }
  0x5b   :  { %2922 = dma.done.wait [#allocation9], 384  }
  0x5c   :  { %2923 = vsyncadd [#allocation9], 4294966912 }
  0x5d   :  { %2924 = dma.done.wait [#allocation12], 32  }
  0x5e   :  { %2925 = vsyncadd [#allocation12], 4294967264 }
  0x5f   :  { %2926 = dma.done.wait [#allocation15], 272  }
  0x60   :  { %2927 = vsyncadd [#allocation15], 4294967024 }
  0x61   :  { %2928 = dma.done.wait [#allocation18], 256  }
  0x62   :  { %2929 = vsyncadd [#allocation18], 4294967040  ;;  %v2942_v0 = vmov 0.0   ;;  %vm2943_vm0 = vmmov 0   ;;  %vm471_vm1 = vcmask 1046528   ;;  %vm199_vm2 = vcmask 108544  }
  0x63   :  { %2407 = vmatprep.subr.bf16.mxu1 %v2942_v0  ;;  %2409 = vmatprep.mubr.msk.bf16.mxu1 %vm2943_vm0, %v2942_v0  ;;  %v2604_v1 = vld [vmem:[#allocation8] sm:$0x7f]   ;;  %v152_v2 = vld [vmem:[#allocation5 + $0x4] sm:$0xf]  ;;  %v151_v3 = vld [vmem:[#allocation5] sm:$0xf] }
  0x64   :  { %2401 = vmatprep.subr.bf16.mxu0 %v2942_v0  ;;  %2403 = vmatprep.mubr.msk.bf16.mxu0 %vm2943_vm0, %v2942_v0  ;;  %v154_v4 = vld [vmem:[#allocation5 + $0xc] sm:$0xf]  ;;  %v3062_v5 = vsel %vm471_vm1, %v2604_v1, 0  ;;  %v164_v6 = vrot.slane %v152_v2, 7  ;;  %v163_v7 = vrot.slane %v151_v3, 7  ;;  %vm405_vm11 = vcmask 1040384  }
  0x65   :  { %v166_v8 = vrot.slane %v154_v4, 7  ;;  %v156_v9 = vld [vmem:[#allocation5 + $0x14] sm:$0xf]  ;;  %2408 = vmatpush3.bf16.msra.mxu1 %v3062_v5  ;;  %2402 = vmatpush3.bf16.msra.mxu0 %v3062_v5  ;;  %vm467_vm14 = vcmask 113664   ;;  %s2945_s7 = smov 32   ;;  %s2946_s0 = smov [#allocation19]  }
  0x66   :  { %v168_v10 = vrot.slane %v156_v9, 7  ;;  %2419 = vmatprep.subr.bf16.mxu1 %v2942_v0  ;;  %v3067_v11 = vsub.f32 %v152_v2, %v164_v6  ;;  %v3069_v12 = vsub.f32 %v151_v3, %v163_v7  ;;  %2413 = vmatprep.subr.bf16.mxu0 %v2942_v0  ;;  %s2251_s21 = sshll.u32 %s2946_s0, 4  ;;  %s2252_s21 = int_to_ptr.vmem [resolvable:$true] %s2251_s21 }
  0x67   :  { %v3071_v13 = vsub.f32 %v154_v4, %v166_v8  ;;  %s2900_s22 = scalar_lea.vmem %s2252_s21, 64  ;;  %p2905_p13 = scmp.lt.s32.totalorder %s2252_s21, %s2252_s21 }
  0x68   :  { %v3074_v14 = vsub.f32 %v156_v9, %v168_v10  ;;  %v188_v15 = vrot.slane %v3067_v11, 1  ;;  %v187_v16 = vrot.slane %v3069_v12, 1  ;;  %p2901_p12 = scmp.ne.s32.totalorder %s2252_s21, %s2900_s22  ;;  %p2906_p0 = scmp.lt.s32.totalorder %s2900_s22, %s2900_s22 }
  0x69   :  { %v190_v17 = vrot.slane %v3071_v13, 1 }
  0x6a   :  { %v192_v18 = vrot.slane %v3074_v14, 1  ;;  %v207_v19 = vsel %vm199_vm2, %v188_v15, 0.0  ;;  %v200_v20 = vsel %vm199_vm2, %v187_v16, 0.0  ;;  %p2907_p1 = por %p2906_p0, %p2905_p13 }
  0x6b   :  { %v208_v21 = vrot.slane %v207_v19, 4  ;;  %v201_v22 = vrot.slane %v200_v20, 4  ;;  %v221_v23 = vsel %vm199_vm2, %v190_v17, 0.0 }
  0x6c   :  { %v235_v24 = vsel %vm199_vm2, %v192_v18, 0.0  ;;  %v222_v25 = vrot.slane %v221_v23, 4  ;;  %p2908_p2 = pnand %p2907_p1, %p2901_p12 }
  0x6d   :  { %v236_v26 = vrot.slane %v235_v24, 4  ;;  %v209_v27 = vadd.f32 %v208_v21, %v207_v19  ;;  %v202_v28 = vadd.f32 %v201_v22, %v200_v20 }
  0x6e   :  { %v223_v29 = vadd.f32 %v222_v25, %v221_v23 }
  0x6f   :  { %v237_v30 = vadd.f32 %v236_v26, %v235_v24  ;;  %v210_v31 = vrot.slane %v209_v27, 2  ;;  %v203_v32 = vrot.slane %v202_v28, 2 }
  0x70   :  { %v224_v33 = vrot.slane %v223_v29, 2 }
  0x71   :  { %v238_v34 = vrot.slane %v237_v30, 2  ;;  %v211_v35 = vadd.f32 %v210_v31, %v209_v27  ;;  %v204_v36 = vadd.f32 %v203_v32, %v202_v28 }
  0x72   :  { %v225_v37 = vadd.f32 %v224_v33, %v223_v29 }
  0x73   :  { %v239_v38 = vadd.f32 %v238_v34, %v237_v30  ;;  %v212_v39 = vrot.slane %v211_v35, 1  ;;  %v205_v40 = vrot.slane %v204_v36, 1 }
  0x74   :  { %v226_v41 = vrot.slane %v225_v37, 1 }
  0x75   :  { %v240_v42 = vrot.slane %v239_v38, 1  ;;  %v213_v43 = vadd.f32 %v212_v39, %v211_v35  ;;  %v206_v44 = vadd.f32 %v205_v40, %v204_v36 }
  0x76   :  { %v227_v45 = vadd.f32 %v226_v41, %v225_v37 }
  0x77   :  { %v241_v46 = vadd.f32 %v240_v42, %v239_v38  ;;  %v3084_v47 = vmul.f32 0.33333334, %v213_v43  ;;  %v3086_v48 = vmul.f32 0.33333334, %v206_v44 }
  0x78   :  { %v3088_v49 = vmul.f32 0.33333334, %v227_v45 }
  0x79   :  { %v3090_v50 = vmul.f32 0.33333334, %v241_v46  ;;  %v250_v51 = vsub.f32 %v3067_v11, %v3084_v47  ;;  %v249_v52 = vsub.f32 %v3069_v12, %v3086_v48 }
  0x7a   :  { %v252_v53 = vsub.f32 %v3071_v13, %v3088_v49 }
  0x7b   :  { %v254_v54 = vsub.f32 %v3074_v14, %v3090_v50  ;;  %v256_v55 = vmul.f32 %v250_v51, %v250_v51  ;;  %v255_v56 = vmul.f32 %v249_v52, %v249_v52 }
  0x7c   :  { %v258_v57 = vmul.f32 %v252_v53, %v252_v53 }
  0x7d   :  { %v260_v58 = vmul.f32 %v254_v54, %v254_v54  ;;  %v268_v59 = vrot.slane %v256_v55, 1  ;;  %v267_v60 = vrot.slane %v255_v56, 1 }
  0x7e   :  { %v270_v61 = vrot.slane %v258_v57, 1  ;;  %v382_v57 = vand.u32 2147483647, %v3067_v11 }
  0x7f   :  { %v272_v62 = vrot.slane %v260_v58, 1  ;;  %v286_v63 = vsel %vm199_vm2, %v268_v59, 0.0  ;;  %v279_v1 = vsel %vm199_vm2, %v267_v60, 0.0 }
  0x80   :  { %v287_v2 = vrot.slane %v286_v63, 4  ;;  %v280_v3 = vrot.slane %v279_v1, 4  ;;  %v300_v4 = vsel %vm199_vm2, %v270_v61, 0.0  ;;  %v381_v61 = vand.u32 2147483647, %v3069_v12 }
  0x81   :  { %v314_v6 = vsel %vm199_vm2, %v272_v62, 0.0  ;;  %v301_v7 = vrot.slane %v300_v4, 4 }
  0x82   :  { %v315_v8 = vrot.slane %v314_v6, 4  ;;  %v288_v9 = vadd.f32 %v287_v2, %v286_v63  ;;  %v281_v10 = vadd.f32 %v280_v3, %v279_v1  ;;  %v384_v3 = vand.u32 2147483647, %v3071_v13 }
  0x83   :  { %v302_v15 = vadd.f32 %v301_v7, %v300_v4 }
  0x84   :  { %v316_v16 = vadd.f32 %v315_v8, %v314_v6  ;;  %v289_v17 = vrot.slane %v288_v9, 2  ;;  %v282_v18 = vrot.slane %v281_v10, 2 }
  0x85   :  { %v303_v19 = vrot.slane %v302_v15, 2 }
  0x86   :  { %v317_v20 = vrot.slane %v316_v16, 2  ;;  %v290_v21 = vadd.f32 %v289_v17, %v288_v9  ;;  %v283_v22 = vadd.f32 %v282_v18, %v281_v10 }
  0x87   :  { %v304_v23 = vadd.f32 %v303_v19, %v302_v15  ;;  %v3138_v19 = vld [vmem:[#allocation10 + $0x8] sm:$0xff]  }
  0x88   :  { %v318_v24 = vadd.f32 %v317_v20, %v316_v16  ;;  %v291_v25 = vrot.slane %v290_v21, 1  ;;  %v284_v26 = vrot.slane %v283_v22, 1  ;;  %v3142_v20 = vld [vmem:[#allocation10] sm:$0xff]  }
  0x89   :  { %v305_v27 = vrot.slane %v304_v23, 1 }
  0x8a   :  { %v319_v28 = vrot.slane %v318_v24, 1  ;;  %v292_v29 = vadd.f32 %v291_v25, %v290_v21  ;;  %v285_v30 = vadd.f32 %v284_v26, %v283_v22  ;;  %v2944_v21 = vmov 0   ;;  %v3152_v22 = vld [vmem:[#allocation11] ss:$0 sm:$0xff] }
  0x8b   :  { %v306_v31 = vadd.f32 %v305_v27, %v304_v23 }
  0x8c   :  { %v320_v32 = vadd.f32 %v319_v28, %v318_v24  ;;  %v322_v33 = vmul.f32 0.5, %v292_v29  ;;  %v321_v34 = vmul.f32 0.5, %v285_v30 }
  0x8d   :  { %v324_v35 = vmul.f32 0.5, %v306_v31 }
  0x8e   :  { %v326_v36 = vmul.f32 0.5, %v320_v32  ;;  %2613 = vrsqrt.f32 %v322_v33  ;;  %vm336_vm3 = vcmp.eq.f32.partialorder %v322_v33, inf  ;;  %vm338_vm4 = vcmp.eq.f32.partialorder %v322_v33, 0.0 }
  0x8f   :  { %2615 = vrsqrt.f32 %v321_v34  ;;  %v339_v38 = vand.u32 2147483648, %v322_v33  ;;  %vm329_vm5 = vcmp.eq.f32.partialorder %v321_v34, inf  ;;  %vm331_vm6 = vcmp.eq.f32.partialorder %v321_v34, 0.0 }
  0x90   :  { %2617 = vrsqrt.f32 %v324_v35  ;;  %v332_v41 = vand.u32 2147483648, %v321_v34  ;;  %vm350_vm7 = vcmp.eq.f32.partialorder %v324_v35, inf  ;;  %vm352_vm8 = vcmp.eq.f32.partialorder %v324_v35, 0.0 }
  0x91   :  { %2619 = vrsqrt.f32 %v326_v36  ;;  %v353_v44 = vand.u32 2147483648, %v324_v35  ;;  %vm364_vm9 = vcmp.eq.f32.partialorder %v326_v36, inf  ;;  %v367_v52 = vand.u32 2147483648, %v326_v36 }
  0x92   :  { %vm366_vm10 = vcmp.eq.f32.partialorder %v326_v36, 0.0 }
  0x9b   :  { %v2614_v37 = vpop.eup %2613 }
  0x9c   :  { %v2616_v39 = vpop.eup %2615  ;;  %v335_v40 = vmul.f32 %v2614_v37, %v322_v33 }
  0x9d   :  { %v2618_v42 = vpop.eup %2617  ;;  %v328_v43 = vmul.f32 %v2616_v39, %v321_v34 }
  0x9e   :  { %v2620_v45 = vpop.eup %2619  ;;  %v337_v46 = vsel %vm336_vm3, %v322_v33, %v335_v40  ;;  %v349_v51 = vmul.f32 %v2618_v42, %v324_v35 }
  0x9f   :  { %v340_v53 = vsel %vm338_vm4, %v339_v38, %v337_v46  ;;  %v330_v54 = vsel %vm329_vm5, %v321_v34, %v328_v43  ;;  %v363_v55 = vmul.f32 %v2620_v45, %v326_v36 }
  0xa0   :  { %v370_v56 = vmul.f32 2.5, %v340_v53  ;;  %v333_v58 = vsel %vm331_vm6, %v332_v41, %v330_v54  ;;  %v351_v59 = vsel %vm350_vm7, %v324_v35, %v349_v51 }
  0xa1   :  { %v369_v60 = vmul.f32 2.5, %v333_v58  ;;  %v354_v62 = vsel %vm352_vm8, %v353_v44, %v351_v59  ;;  %v365_v63 = vsel %vm364_vm9, %v326_v36, %v363_v55 }
  0xa2   :  { %v376_v1 = vadd.f32 %v370_v56, %v3084_v47  ;;  %v372_v2 = vmul.f32 2.5, %v354_v62  ;;  %v368_v4 = vsel %vm366_vm10, %v367_v52, %v365_v63 }
  0xa3   :  { %v375_v6 = vadd.f32 %v369_v60, %v3086_v48  ;;  %v374_v7 = vmul.f32 2.5, %v368_v4 }
  0xa4   :  { %vm388_vm12 = vcmp.gt.f32.partialorder %v382_v57, %v376_v1  ;;  %v378_v11 = vadd.f32 %v372_v2, %v3088_v49  ;;  %v386_v49 = vand.u32 2147483647, %v3074_v14  ;;  %v153_v1 = vld [vmem:[#allocation5 + $0x8] sm:$0xf] }
  0xa5   :  { %v2265_v8 = vsel %vm388_vm12, 1.0, %v2942_v0  ;;  %vm387_vm13 = vcmp.gt.f32.partialorder %v381_v61, %v375_v6  ;;  %v380_v48 = vadd.f32 %v374_v7, %v3090_v50  ;;  %v165_v2 = vrot.slane %v153_v1, 7  ;;  %v155_v7 = vld [vmem:[#allocation5 + $0x10] sm:$0xf] }
  0xa6   :  { %v407_v12 = vsel %vm405_vm11, 0.0, %v2265_v8  ;;  %v2264_v9 = vsel %vm387_vm13, 1.0, %v2942_v0  ;;  %vm390_vm15 = vcmp.gt.f32.partialorder %v384_v3, %v378_v11  ;;  %v167_v8 = vrot.slane %v155_v7, 7 }
  0xa7   :  { %v450_v47 = vpack.c.bf16 %v407_v12, %v407_v12  ;;  %v406_v13 = vsel %vm405_vm11, 0.0, %v2264_v9  ;;  %v2267_v10 = vsel %vm390_vm15, 1.0, %v2942_v0  ;;  %vm392_vm1 = vcmp.gt.f32.partialorder %v386_v49, %v380_v48 }
  0xa8   :  { %v449_v15 = vpack.c.bf16 %v406_v13, %v406_v13  ;;  %v409_v16 = vsel %vm405_vm11, 0.0, %v2267_v10  ;;  %v2269_v50 = vsel %vm392_vm1, 1.0, %v2942_v0  ;;  %v3168_v3 = vsub.f32 %v153_v1, %v165_v2 }
  0xa9   :  { %2410 = vmatmul.mubr.msk.bf16.vlgmr.msra.gmra.mxu1 %vm467_vm14, %v450_v47  ;;  %v452_v14 = vpack.c.bf16 %v409_v16, %v409_v16  ;;  %v411_v17 = vsel %vm405_vm11, 0.0, %v2269_v50  ;;  %v3172_v9 = vsub.f32 %v155_v7, %v167_v8 }
  0xaa   :  { %2420 = vmatpush3.bf16.msra.mxu1 %v3062_v5  ;;  %2421 = vmatprep.mubr.msk.bf16.mxu1 %vm2943_vm0, %v2942_v0  ;;  %v454_v18 = vpack.c.bf16 %v411_v17, %v411_v17  ;;  %v189_v4 = vrot.slane %v3168_v3, 1 }
  0xab   :  { %2431 = vmatprep.subr.bf16.mxu1 %v2942_v0  ;;  %2404 = vmatmul.mubr.msk.bf16.vlgmr.msra.gmra.mxu0 %vm467_vm14, %v449_v15  ;;  %v191_v13 = vrot.slane %v3172_v9, 1 }
  0xac   :  { %2414 = vmatpush3.bf16.msra.mxu0 %v3062_v5  ;;  %2415 = vmatprep.mubr.msk.bf16.mxu0 %vm2943_vm0, %v2942_v0  ;;  %v214_v6 = vsel %vm199_vm2, %v189_v4, 0.0 }
  0xad   :  { %2425 = vmatprep.subr.bf16.mxu0 %v2942_v0  ;;  %v215_v11 = vrot.slane %v214_v6, 4  ;;  %v228_v15 = vsel %vm199_vm2, %v191_v13, 0.0  ;;  %v383_v13 = vand.u32 2147483647, %v3168_v3 }
  0xae   :  { %v229_v49 = vrot.slane %v228_v15, 4 }
  0xaf   :  { %v216_v12 = vadd.f32 %v215_v11, %v214_v6 }
  0xb1   :  { %2422 = vmatmul.mubr.msk.bf16.vlgmr.msra.gmra.mxu1 %vm467_vm14, %v452_v14  ;;  %v217_v47 = vrot.slane %v216_v12, 2  ;;  %v230_v14 = vadd.f32 %v229_v49, %v228_v15  ;;  %v3202_v49 = vld [vmem:[%s3593_s8 + $0x8] sm:$0xff]  }
  0xb2   :  { %2432 = vmatpush3.bf16.msra.mxu1 %v3062_v5  ;;  %2433 = vmatprep.mubr.msk.bf16.mxu1 %vm2943_vm0, %v2942_v0 }
  0xb3   :  { %2445 = vmatprep.subr.bf16.mxu1 %v2942_v0  ;;  %v218_v10 = vadd.f32 %v217_v47, %v216_v12  ;;  %v231_v17 = vrot.slane %v230_v14, 2 }
  0xb5   :  { %v219_v48 = vrot.slane %v218_v10, 1 }
  0xb7   :  { %v220_v16 = vadd.f32 %v219_v48, %v218_v10 }
  0xb9   :  { %2434 = vmatmul.mubr.msk.bf16.vlgmr.msra.gmra.mxu1 %vm467_vm14, %v454_v18  ;;  %v245_v50 = vmul.f32 0.33333334, %v220_v16 }
  0xba   :  { %2446 = vmatpush3.bf16.msra.mxu1 %v3138_v19  ;;  %2449 = vmatprep.mubr.msk.bf16.mxu1 %vm2943_vm0, %v2942_v0 }
  0xbb   :  { %2447 = vmatprep.subr.bf16.mxu1 %v2942_v0  ;;  %v251_v18 = vsub.f32 %v3168_v3, %v245_v50 }
  0xbe   :  { %2448 = vmatpush3.bf16.msra.mxu1 %v3142_v20 }
  0xbf   :  { %2461 = vmatprep.subr.bf16.mxu1 %v2942_v0 }
  0xc1   :  { %2450 = vmatmul.mubr.bf16.vlgmr.msra.gmra.mxu1 %v2944_v21 }
  0xc2   :  { %2465 = vmatprep.mubr.msk.bf16.mxu1 %vm2943_vm0, %v2942_v0  ;;  %2462 = vmatpush3.bf16.msra.mxu1 %v3202_v49 }
  0xc3   :  { %2463 = vmatprep.subr.bf16.mxu1 %v2942_v0 }
 0x169   :  { %v552_v23 = vpop.f32.mrf.mxu1 }
 0x16a   :  { %v553_v24 = vadd.f32 %v3152_v22, %v552_v23  ;;  %v232_v23 = vadd.f32 %v231_v17, %v230_v14 }
 0x16b   :  { %v2411_v25 = vpop.f32.mrf.mxu1  ;;  %v509_v26 = vpop.f32.mrf.mxu0 }
 0x16c   :  { %731 = vst [vmem:[#allocation2 + $0x4] sm:$0xf] %v553_v24  ;;  %v510_v27 = vadd.f32 %v3152_v22, %v509_v26  ;;  %v257_v24 = vmul.f32 %v251_v18, %v251_v18  ;;  %v233_v25 = vrot.slane %v232_v23, 1 }
 0x16d   :  { %v555_v28 = vpop.f32.mrf.mxu1  ;;  %v2405_v29 = vpop.f32.mrf.mxu0 }
 0x16e   :  { %730 = vst [vmem:[#allocation2] sm:$0xf] %v510_v27  ;;  %v269_v26 = vrot.slane %v257_v24, 1  ;;  %v234_v27 = vadd.f32 %v233_v25, %v232_v23  ;;  %v3211_v25 = vld [vmem:[%s3593_s8] sm:$0xff]  }
 0x16f   :  { %v2412_v30 = vpop.f32.mrf.mxu1  ;;  %v512_v31 = vpop.f32.mrf.mxu0  ;;  %2464 = vmatpush3.bf16.msra.mxu1 %v3211_v25 }
 0x170   :  { %v293_v28 = vsel %vm199_vm2, %v269_v26, 0.0  ;;  %v3178_v29 = vmul.f32 0.33333334, %v234_v27  ;;  %v385_v27 = vand.u32 2147483647, %v3172_v9  ;;  %2477 = vmatprep.subr.bf16.mxu1 %v2942_v0 }
 0x171   :  { %v638_v32 = vpop.f32.mrf.mxu1  ;;  %v2406_v33 = vpop.f32.mrf.mxu0  ;;  %v294_v30 = vrot.slane %v293_v28, 4 }
 0x172   :  { %v639_v34 = vadd.f32 %v3152_v22, %v638_v32  ;;  %v253_v31 = vsub.f32 %v3172_v9, %v3178_v29 }
 0x173   :  { %v2423_v35 = vpop.f32.mrf.mxu1  ;;  %v295_v32 = vadd.f32 %v294_v30, %v293_v28 }
 0x174   :  { %733 = vst [vmem:[#allocation2 + $0xc] sm:$0xf] %v639_v34  ;;  %v259_v33 = vmul.f32 %v253_v31, %v253_v31  ;;  %v3185_v35 = vstv %s3589_s4 }
 0x175   :  { %v641_v36 = vpop.f32.mrf.mxu1  ;;  %v792_v43 = vld [vmem:[#allocation2] sm:$0xf]  ;;  %v296_v34 = vrot.slane %v295_v32, 2 }
 0x176   :  { %v271_v36 = vrot.slane %v259_v33, 1 }
 0x177   :  { %v2424_v37 = vpop.f32.mrf.mxu1 }
 0x178   :  { %v297_v37 = vadd.f32 %v296_v34, %v295_v32 }
 0x179   :  { %v724_v38 = vpop.f32.mrf.mxu1 }
 0x17a   :  { %v725_v39 = vadd.f32 %v3152_v22, %v724_v38  ;;  %v307_v38 = vsel %vm199_vm2, %v271_v36, 0.0  ;;  %vm881_vm2 = vcmask 1044224  }
 0x17b   :  { %v2435_v40 = vpop.f32.mrf.mxu1 }
 0x17c   :  { %735 = vst [vmem:[#allocation2 + $0x14] sm:$0xf] %v725_v39  ;;  %v871_v39 = vsub.f32 0.0, %v3185_v35  ;;  %v298_v40 = vrot.slane %v297_v37, 1 }
 0x17d   :  { %v727_v41 = vpop.f32.mrf.mxu1 }
 0x17e   :  { %v308_v41 = vrot.slane %v307_v38, 4  ;;  %vm872_vm3 = vcmp.gt.f32.partialorder %v871_v39, 0.0 }
 0x17f   :  { %v2436_v42 = vpop.f32.mrf.mxu1 }
 0x180   :  { %v299_v42 = vadd.f32 %v298_v40, %v297_v37  ;;  %v3234_v40 = vld [vmem:[#allocation16 + $0x8] sm:$0xff]  }
 0x181   :  { %v839_v44 = vpop.f32.mrf.mxu1 }
 0x182   :  { %v845_v45 = vadd.f32 %v839_v44, %v792_v43  ;;  %v309_v43 = vadd.f32 %v308_v41, %v307_v38  ;;  %v323_v44 = vmul.f32 0.5, %v299_v42 }
 0x183   :  { %v2451_v46 = vpop.f32.mrf.mxu1 }
 0x184   :  { %2621 = vtanh.f32 %v845_v45  ;;  %v2285_v54 = vmul.f32 -1.442695, %v845_v45  ;;  %v310_v45 = vrot.slane %v309_v43, 2  ;;  %vm343_vm5 = vcmp.eq.f32.partialorder %v323_v44, inf }
 0x185   :  { %v842_v51 = vpop.f32.mrf.mxu1  ;;  %v346_v6 = vand.u32 2147483648, %v323_v44  ;;  %vm345_vm6 = vcmp.eq.f32.partialorder %v323_v44, 0.0 }
 0x186   :  { %2623 = vpow2.f32 %v2285_v54  ;;  %v311_v46 = vadd.f32 %v310_v45, %v309_v43  ;;  %v2286_v51 = vsel %vm872_vm3, 1.0, %v2942_v0  ;;  %v3242_v45 = vld [vmem:[#allocation16] sm:$0xff]  }
 0x187   :  { %v2452_v52 = vpop.f32.mrf.mxu1 }
 0x188   :  { %v312_v52 = vrot.slane %v311_v46, 1 }
 0x18a   :  { %v313_v54 = vadd.f32 %v312_v52, %v311_v46 }
 0x191   :  { %v2622_v53 = vpop.eup %2621 }
 0x192   :  { %855 = vrot.lane.b32.xlu0 %v2622_v53, %s2934_s30  ;;  %v875_v53 = vmul.f32 %v2286_v51, %v3185_v35 }
 0x193   :  { %v2624_v55 = vpop.eup %2623 }
 0x194   :  { %v849_v56 = vadd.f32 1.0, %v2624_v55 }
 0x196   :  { %2625 = vrcp.f32 %v849_v56 }
 0x1a3   :  { %v3159_v57 = vpop.eup %2625 }
 0x1a4   :  { %v853_v60 = vmul.f32 0.0, %v3159_v57 }
 0x204   :  { %v856_v58 = vpop.permute.xlu0 %855 }
 0x205   :  { %v858_v59 = vmul.f32 %v3159_v57, %v856_v58  ;;  %v325_v58 = vmul.f32 0.5, %v313_v54 }
 0x207   :  { %860 = vrot.lane.b32.xlu0 %v858_v59, %s2945_s7  ;;  %vm357_vm7 = vcmp.eq.f32.partialorder %v325_v58, inf  ;;  %v360_v48 = vand.u32 2147483648, %v325_v58  ;;  %vm359_vm9 = vcmp.eq.f32.partialorder %v325_v58, 0.0 }
 0x279   :  { %v861_v61 = vpop.permute.xlu0 %860 }
 0x27a   :  { %v3164_v62 = vadd.f32 %v861_v61, %v853_v60 }
 0x27c   :  { %2627 = vtanh.f32 %v3164_v62 }
 0x27d   :  { %2629 = vrsqrt.f32 %v323_v44 }
 0x27e   :  { %2631 = vrsqrt.f32 %v325_v58 }
 0x289   :  { %v2628_v63 = vpop.eup %2627 }
 0x28a   :  { %866 = vrot.lane.b32.xlu1 %v2628_v63, %s2934_s30  ;;  %v2630_v61 = vpop.eup %2629 }
 0x28b   :  { %v342_v2 = vmul.f32 %v2630_v61, %v323_v44  ;;  %v2632_v10 = vpop.eup %2631 }
 0x28c   :  { %v356_v16 = vmul.f32 %v2632_v10, %v325_v58 }
 0x28d   :  { %v344_v11 = vsel %vm343_vm5, %v323_v44, %v342_v2 }
 0x28e   :  { %v347_v7 = vsel %vm345_vm6, %v346_v6, %v344_v11  ;;  %v358_v3 = vsel %vm357_vm7, %v325_v58, %v356_v16 }
 0x28f   :  { %v371_v8 = vmul.f32 2.5, %v347_v7  ;;  %v361_v24 = vsel %vm359_vm9, %v360_v48, %v358_v3  ;;  %v1051_v3 = vld [vmem:[#allocation2 + $0x4] sm:$0xf] }
 0x290   :  { %v373_v26 = vmul.f32 2.5, %v361_v24 }
 0x291   :  { %v377_v47 = vadd.f32 %v371_v8, %v245_v50 }
 0x292   :  { %v379_v30 = vadd.f32 %v373_v26, %v3178_v29 }
 0x293   :  { %vm389_vm8 = vcmp.gt.f32.partialorder %v383_v13, %v377_v47 }
 0x294   :  { %v2266_v17 = vsel %vm389_vm8, 1.0, %v2942_v0  ;;  %vm391_vm10 = vcmp.gt.f32.partialorder %v385_v27, %v379_v30 }
 0x295   :  { %v408_v50 = vsel %vm405_vm11, 0.0, %v2266_v17  ;;  %v2268_v32 = vsel %vm391_vm10, 1.0, %v2942_v0 }
 0x296   :  { %v451_v23 = vpack.c.bf16 %v408_v50, %v408_v50  ;;  %v410_v33 = vsel %vm405_vm11, 0.0, %v2268_v32  ;;  %vm748_vm11 = vcmask 261120  }
 0x297   :  { %v453_v36 = vpack.c.bf16 %v410_v33, %v410_v33 }
 0x298   :  { %2416 = vmatmul.mubr.msk.bf16.vlgmr.msra.gmra.mxu0 %vm467_vm14, %v451_v23 }
 0x299   :  { %2426 = vmatpush3.bf16.msra.mxu0 %v3062_v5  ;;  %2427 = vmatprep.mubr.msk.bf16.mxu0 %vm2943_vm0, %v2942_v0 }
 0x29a   :  { %2437 = vmatprep.subr.bf16.mxu0 %v2942_v0 }
 0x2a0   :  { %2428 = vmatmul.mubr.msk.bf16.vlgmr.msra.gmra.mxu0 %vm467_vm14, %v453_v36 }
 0x2a1   :  { %2438 = vmatpush3.bf16.msra.mxu0 %v3202_v49  ;;  %2441 = vmatprep.mubr.msk.bf16.mxu0 %vm2943_vm0, %v2942_v0 }
 0x2a2   :  { %2439 = vmatprep.subr.bf16.mxu0 %v2942_v0 }
 0x2a5   :  { %2440 = vmatpush3.bf16.msra.mxu0 %v3211_v25 }
 0x2a6   :  { %2453 = vmatprep.subr.bf16.mxu0 %v2942_v0 }
 0x2a8   :  { %2442 = vmatmul.mubr.bf16.vlgmr.msra.gmra.mxu0 %v2944_v21  ;;  %v3247_v21 = vld [vmem:[#allocation13] ss:$0 sm:$0xff] }
 0x2a9   :  { %2454 = vmatpush3.bf16.msra.mxu0 %v3234_v40  ;;  %2457 = vmatprep.mubr.msk.bf16.mxu0 %vm2943_vm0, %v2942_v0 }
 0x2aa   :  { %2455 = vmatprep.subr.bf16.mxu0 %v2942_v0 }
 0x2ad   :  { %2456 = vmatpush3.bf16.msra.mxu0 %v3242_v45 }
 0x2ae   :  { %2469 = vmatprep.subr.bf16.mxu0 %v2942_v0 }
 0x2fc   :  { %v867_v55 = vpop.permute.xlu1 %866 }
 0x2fd   :  { %v869_v56 = vmul.f32 %v3159_v57, %v867_v55 }
 0x2ff   :  { %v876_v59 = vsub.f32 %v869_v56, %v875_v53  ;;  %v3250_v53 = vld [vmem:[#allocation14] ss:$0 sm:$0xff] }
 0x301   :  { %v877_v60 = vsub.f32 %v876_v59, %v3185_v35  ;;  %v1052_v34 = vpack.c.bf16 %v876_v59, %v876_v59 }
 0x303   :  { %vm878_vm4 = vcmp.gt.f32.partialorder %v877_v60, 0.0 }
 0x304   :  { %v3194_v63 = vsel %vm878_vm4, 1.0, %v2942_v0 }
 0x305   :  { %v882_v1 = vsel %vm881_vm2, %v3194_v63, 0.0 }
 0x306   :  { %v883_v4 = vrot.slane %v882_v1, 4 }
 0x308   :  { %v884_v57 = vadd.f32 %v883_v4, %v882_v1 }
 0x30a   :  { %v885_v12 = vrot.slane %v884_v57, 2 }
 0x30c   :  { %v886_v15 = vadd.f32 %v885_v12, %v884_v57 }
 0x30e   :  { %v887_v14 = vrot.slane %v886_v15, 1 }
 0x310   :  { %v888_v18 = vadd.f32 %v887_v14, %v886_v15  ;;  %v3272_v15 = vld [vmem:[%s3594_s9] ss:$0 sm:$0xff] }
 0x312   :  { %v890_v28 = vmul.f32 0.25, %v888_v18 }
 0x314   :  { %v891_v31 = vsub.f32 %v3194_v63, %v890_v28 }
 0x316   :  { %902 = vrot.lane.b32.xlu1 %v891_v31, %s2945_s7  ;;  %v892_v9 = vmul.f32 %v891_v31, %v891_v31 }
 0x318   :  { %v893_v5 = vsel %vm881_vm2, %v892_v9, 0.0 }
 0x319   :  { %v894_v37 = vrot.slane %v893_v5, 4 }
 0x31a   :  { %1054 = vrot.lane.b32.xlu1 %v1052_v34, %s2945_s7 }
 0x31b   :  { %v895_v29 = vadd.f32 %v894_v37, %v893_v5 }
 0x31d   :  { %v896_v38 = vrot.slane %v895_v29, 2 }
 0x31f   :  { %v897_v39 = vadd.f32 %v896_v38, %v895_v29 }
 0x321   :  { %v898_v41 = vrot.slane %v897_v39, 1 }
 0x323   :  { %v899_v42 = vadd.f32 %v898_v41, %v897_v39 }
 0x325   :  { %v900_v43 = vmul.f32 0.25, %v899_v42 }
 0x327   :  { %v906_v44 = vadd.f32 1e-05, %v900_v43 }
 0x329   :  { %2633 = vrsqrt.f32 %v906_v44 }
 0x336   :  { %v2634_v46 = vpop.eup %2633 }
 0x337   :  { %909 = vrot.lane.b32.xlu0 %v2634_v46, %s2945_s7 }
 0x358   :  { %v595_v60 = vpop.f32.mrf.mxu0 }
 0x359   :  { %v596_v61 = vadd.f32 %v3152_v22, %v595_v60 }
 0x35a   :  { %v2417_v1 = vpop.f32.mrf.mxu0 }
 0x35b   :  { %732 = vst [vmem:[#allocation2 + $0x8] sm:$0xf] %v596_v61 }
 0x35c   :  { %v598_v2 = vpop.f32.mrf.mxu0 }
 0x35e   :  { %v2418_v4 = vpop.f32.mrf.mxu0 }
 0x360   :  { %v681_v6 = vpop.f32.mrf.mxu0 }
 0x361   :  { %v682_v11 = vadd.f32 %v3152_v22, %v681_v6  ;;  %v1124_v6 = vmul.f32 %v3194_v63, %v3185_v35 }
 0x362   :  { %v2429_v57 = vpop.f32.mrf.mxu0 }
 0x363   :  { %734 = vst [vmem:[#allocation2 + $0x10] sm:$0xf] %v682_v11 }
 0x364   :  { %v684_v7 = vpop.f32.mrf.mxu0 }
 0x366   :  { %v2430_v8 = vpop.f32.mrf.mxu0 }
 0x368   :  { %v786_v12 = vpop.f32.mrf.mxu0 }
 0x36a   :  { %v2443_v47 = vpop.f32.mrf.mxu0 }
 0x36c   :  { %v789_v13 = vpop.f32.mrf.mxu0 }
 0x36e   :  { %v2444_v10 = vpop.f32.mrf.mxu0 }
 0x388   :  { %v903_v51 = vpop.permute.xlu1 %902 }
 0x389   :  { %v905_v52 = vmul.f32 %v3247_v21, %v903_v51 }
 0x38c   :  { %v1055_v59 = vpop.permute.xlu1 %1054 }
 0x3a9   :  { %v910_v54 = vpop.permute.xlu0 %909 }
 0x3aa   :  { %v912_v55 = vmul.f32 %v910_v54, %v905_v52 }
 0x3ac   :  { %v913_v56 = vadd.f32 %v3250_v53, %v912_v55 }
 0x3ae   :  { %v914_v58 = vpack.c.bf16 %v913_v56, %v913_v56  ;;  %v3291_v56 = vstv %s3595_s10 }
 0x3b0   :  { %2458 = vmatmul.mubr.msk.bf16.vlgmr.msra.gmra.mxu0 %vm748_vm11, %v914_v58  ;;  %v996_v58 = vsub.f32 0.0, %v3291_v56 }
 0x3b1   :  { %2470 = vmatpush3.bf16.msra.mxu0 %v3138_v19  ;;  %2473 = vmatprep.mubr.msk.bf16.mxu0 %vm2943_vm0, %v2942_v0 }
 0x3b2   :  { %2471 = vmatprep.subr.bf16.mxu0 %v2942_v0  ;;  %vm997_vm12 = vcmp.gt.f32.partialorder %v996_v58, 0.0 }
 0x3b5   :  { %2472 = vmatpush3.bf16.msra.mxu0 %v3142_v20 }
 0x3b6   :  { %2485 = vmatprep.subr.bf16.mxu0 %v2942_v0 }
 0x3b8   :  { %2474 = vmatmul.mubr.msk.bf16.vlgmr.msra.gmra.mxu0 %vm748_vm11, %v1055_v59 }
 0x3b9   :  { %2486 = vmatpush3.bf16.msra.mxu0 %v3202_v49  ;;  %2489 = vmatprep.mubr.msk.bf16.mxu0 %vm2943_vm0, %v2942_v0 }
 0x3ba   :  { %2487 = vmatprep.subr.bf16.mxu0 %v2942_v0 }
 0x3bd   :  { %2488 = vmatpush3.bf16.msra.mxu0 %v3211_v25 }
 0x3be   :  { %2501 = vmatprep.subr.bf16.mxu0 %v2942_v0 }
 0x470   :  { %v964_v48 = vpop.f32.mrf.mxu0 }
 0x471   :  { %v965_v16 = vadd.f32 %v964_v48, %v786_v12 }
 0x472   :  { %v2459_v14 = vpop.f32.mrf.mxu0 }
 0x473   :  { %v970_v17 = vadd.f32 %v3272_v15, %v965_v16 }
 0x474   :  { %v967_v50 = vpop.f32.mrf.mxu0 }
 0x475   :  { %2635 = vtanh.f32 %v970_v17  ;;  %v2291_v31 = vmul.f32 -1.442695, %v970_v17 }
 0x476   :  { %v2460_v22 = vpop.f32.mrf.mxu0 }
 0x478   :  { %v1093_v18 = vpop.f32.mrf.mxu0 }
 0x479   :  { %v1099_v23 = vadd.f32 %v1093_v18, %v1051_v3 }
 0x47a   :  { %v2475_v24 = vpop.f32.mrf.mxu0 }
 0x47b   :  { %2637 = vtanh.f32 %v1099_v23  ;;  %v2295_v9 = vmul.f32 -1.442695, %v1099_v23 }
 0x47c   :  { %v1096_v26 = vpop.f32.mrf.mxu0  ;;  %2639 = vpow2.f32 %v2291_v31 }
 0x47d   :  { %2641 = vpow2.f32 %v2295_v9 }
 0x47e   :  { %v2476_v27 = vpop.f32.mrf.mxu0 }
 0x482   :  { %v2636_v28 = vpop.eup %2635 }
 0x483   :  { %980 = vrot.lane.b32.xlu1 %v2636_v28, %s2934_s30 }
 0x488   :  { %v2638_v30 = vpop.eup %2637 }
 0x489   :  { %1109 = vrot.lane.b32.xlu0 %v2638_v30, %s2934_s30  ;;  %v2640_v32 = vpop.eup %2639 }
 0x48a   :  { %v974_v33 = vadd.f32 1.0, %v2640_v32  ;;  %v2642_v5 = vpop.eup %2641 }
 0x48b   :  { %v1103_v34 = vadd.f32 1.0, %v2642_v5 }
 0x48c   :  { %2643 = vrcp.f32 %v974_v33 }
 0x48d   :  { %2645 = vrcp.f32 %v1103_v34 }
 0x499   :  { %v2644_v36 = vpop.eup %2643 }
 0x49a   :  { %v2646_v38 = vpop.eup %2645  ;;  %v978_v42 = vmul.f32 0.0, %v2644_v36 }
 0x49b   :  { %v1107_v46 = vmul.f32 %v2646_v38, %v3164_v62  ;;  %v2292_v62 = vsel %vm997_vm12, 1.0, %v2942_v0 }
 0x49c   :  { %v1000_v59 = vmul.f32 %v2292_v62, %v3291_v56 }
 0x4f5   :  { %v981_v37 = vpop.permute.xlu1 %980 }
 0x4f6   :  { %v983_v29 = vmul.f32 %v2644_v36, %v981_v37 }
 0x4f8   :  { %985 = vrot.lane.b32.xlu1 %v983_v29, %s2945_s7 }
 0x4fb   :  { %v1110_v39 = vpop.permute.xlu0 %1109 }
 0x4fc   :  { %v1112_v41 = vmul.f32 %v2646_v38, %v1110_v39 }
 0x4fe   :  { %1114 = vrot.lane.b32.xlu0 %v1112_v41, %s2945_s7 }
 0x56a   :  { %v986_v43 = vpop.permute.xlu1 %985 }
 0x56b   :  { %v3279_v44 = vadd.f32 %v986_v43, %v978_v42 }
 0x56d   :  { %2647 = vtanh.f32 %v3279_v44 }
 0x570   :  { %v1115_v51 = vpop.permute.xlu0 %1114 }
 0x571   :  { %v3283_v52 = vadd.f32 %v1115_v51, %v1107_v46 }
 0x573   :  { %2649 = vtanh.f32 %v3283_v52 }
 0x57a   :  { %v2648_v54 = vpop.eup %2647 }
 0x57b   :  { %991 = vrot.lane.b32.xlu1 %v2648_v54, %s2934_s30 }
 0x580   :  { %v2650_v55 = vpop.eup %2649 }
 0x581   :  { %1120 = vrot.lane.b32.xlu0 %v2650_v55, %s2934_s30 }
 0x5ed   :  { %v992_v60 = vpop.permute.xlu1 %991 }
 0x5ee   :  { %v994_v61 = vmul.f32 %v2644_v36, %v992_v60 }
 0x5f0   :  { %v3296_v1 = vsub.f32 %v994_v61, %v1000_v59  ;;  %v1285_v59 = vld [vmem:[#allocation2 + $0x8] sm:$0xf] }
 0x5f2   :  { %v1003_v2 = vpack.c.bf16 %v3296_v1, %v3296_v1 }
 0x5f3   :  { %v1121_v4 = vpop.permute.xlu0 %1120 }
 0x5f4   :  { %v1123_v11 = vmul.f32 %v2646_v38, %v1121_v4  ;;  %1005 = vrot.lane.b32.xlu0 %v1003_v2, %s2945_s7 }
 0x5f6   :  { %v1125_v57 = vsub.f32 %v1123_v11, %v1124_v6 }
 0x5f8   :  { %v1126_v7 = vsub.f32 %v1125_v57, %v3185_v35  ;;  %v1286_v3 = vpack.c.bf16 %v1125_v57, %v1125_v57 }
 0x5fa   :  { %vm1127_vm13 = vcmp.gt.f32.partialorder %v1126_v7, 0.0 }
 0x5fb   :  { %v3305_v8 = vsel %vm1127_vm13, 1.0, %v2942_v0 }
 0x5fc   :  { %v1130_v12 = vsel %vm881_vm2, %v3305_v8, 0.0 }
 0x5fd   :  { %v1131_v47 = vrot.slane %v1130_v12, 4 }
 0x5ff   :  { %v1132_v13 = vadd.f32 %v1131_v47, %v1130_v12 }
 0x601   :  { %v1133_v10 = vrot.slane %v1132_v13, 2 }
 0x603   :  { %v1134_v48 = vadd.f32 %v1133_v10, %v1132_v13 }
 0x605   :  { %v1135_v16 = vrot.slane %v1134_v48, 1 }
 0x607   :  { %v1136_v14 = vadd.f32 %v1135_v16, %v1134_v48 }
 0x609   :  { %v1137_v63 = vmul.f32 0.25, %v1136_v14 }
 0x60b   :  { %v1138_v17 = vsub.f32 %v3305_v8, %v1137_v63 }
 0x60d   :  { %1149 = vrot.lane.b32.xlu1 %v1138_v17, %s2945_s7  ;;  %v1139_v50 = vmul.f32 %v1138_v17, %v1138_v17 }
 0x60f   :  { %v1140_v22 = vsel %vm881_vm2, %v1139_v50, 0.0 }
 0x610   :  { %v1141_v18 = vrot.slane %v1140_v22, 4 }
 0x611   :  { %1288 = vrot.lane.b32.xlu1 %v1286_v3, %s2945_s7 }
 0x612   :  { %v1142_v23 = vadd.f32 %v1141_v18, %v1140_v22 }
 0x614   :  { %v1143_v24 = vrot.slane %v1142_v23, 2 }
 0x616   :  { %v1144_v26 = vadd.f32 %v1143_v24, %v1142_v23 }
 0x618   :  { %v1145_v27 = vrot.slane %v1144_v26, 1 }
 0x61a   :  { %v1146_v28 = vadd.f32 %v1145_v27, %v1144_v26 }
 0x61c   :  { %v1147_v30 = vmul.f32 0.25, %v1146_v28 }
 0x61e   :  { %v1153_v31 = vadd.f32 1e-05, %v1147_v30 }
 0x620   :  { %2651 = vrsqrt.f32 %v1153_v31 }
 0x62d   :  { %v2652_v9 = vpop.eup %2651 }
 0x62e   :  { %1156 = vrot.lane.b32.xlu0 %v2652_v9, %s2945_s7 }
 0x666   :  { %v1006_v32 = vpop.permute.xlu0 %1005 }
 0x667   :  { %2466 = vmatmul.mubr.msk.bf16.vlgmr.msra.gmra.mxu1 %vm748_vm11, %v1006_v32 }
 0x668   :  { %2478 = vmatpush3.bf16.msra.mxu1 %v3234_v40  ;;  %2481 = vmatprep.mubr.msk.bf16.mxu1 %vm2943_vm0, %v2942_v0 }
 0x669   :  { %2479 = vmatprep.subr.bf16.mxu1 %v2942_v0 }
 0x66c   :  { %2480 = vmatpush3.bf16.msra.mxu1 %v3242_v45 }
 0x66d   :  { %2493 = vmatprep.subr.bf16.mxu1 %v2942_v0 }
 0x67f   :  { %v1150_v33 = vpop.permute.xlu1 %1149 }
 0x680   :  { %v1152_v5 = vmul.f32 %v3247_v21, %v1150_v33 }
 0x683   :  { %v1289_v38 = vpop.permute.xlu1 %1288 }
 0x6a0   :  { %v1157_v34 = vpop.permute.xlu0 %1156 }
 0x6a1   :  { %v1159_v36 = vmul.f32 %v1157_v34, %v1152_v5 }
 0x6a3   :  { %v1160_v37 = vadd.f32 %v3250_v53, %v1159_v36  ;;  %v1358_v36 = vmul.f32 %v3305_v8, %v3185_v35 }
 0x6a5   :  { %v1161_v29 = vpack.c.bf16 %v1160_v37, %v1160_v37 }
 0x6a7   :  { %2482 = vmatmul.mubr.msk.bf16.vlgmr.msra.gmra.mxu1 %vm748_vm11, %v1161_v29 }
 0x6a8   :  { %2494 = vmatpush3.bf16.msra.mxu1 %v3138_v19  ;;  %2497 = vmatprep.mubr.msk.bf16.mxu1 %vm2943_vm0, %v2942_v0 }
 0x6a9   :  { %2495 = vmatprep.subr.bf16.mxu1 %v2942_v0 }
 0x6ac   :  { %2496 = vmatpush3.bf16.msra.mxu1 %v3142_v20 }
 0x6ad   :  { %2509 = vmatprep.subr.bf16.mxu1 %v2942_v0 }
 0x6af   :  { %2498 = vmatmul.mubr.msk.bf16.vlgmr.msra.gmra.mxu1 %vm748_vm11, %v1289_v38 }
 0x6b0   :  { %2510 = vmatpush3.bf16.msra.mxu1 %v3202_v49  ;;  %2513 = vmatprep.mubr.msk.bf16.mxu1 %vm2943_vm0, %v2942_v0 }
 0x6b1   :  { %2511 = vmatprep.subr.bf16.mxu1 %v2942_v0 }
 0x6b4   :  { %2512 = vmatpush3.bf16.msra.mxu1 %v3211_v25 }
 0x6b5   :  { %2525 = vmatprep.subr.bf16.mxu1 %v2942_v0 }
 0x727   :  { %v1044_v39 = vpop.f32.mrf.mxu1 }
 0x729   :  { %v2467_v41 = vpop.f32.mrf.mxu1 }
 0x72b   :  { %v1047_v42 = vpop.f32.mrf.mxu1 }
 0x72d   :  { %v2468_v43 = vpop.f32.mrf.mxu1 }
 0x767   :  { %v1199_v46 = vpop.f32.mrf.mxu1 }
 0x768   :  { %v1200_v51 = vadd.f32 %v1199_v46, %v1044_v39 }
 0x769   :  { %v2483_v54 = vpop.f32.mrf.mxu1 }
 0x76a   :  { %v1205_v55 = vadd.f32 %v3272_v15, %v1200_v51 }
 0x76b   :  { %v1202_v58 = vpop.f32.mrf.mxu1 }
 0x76c   :  { %2653 = vtanh.f32 %v1205_v55  ;;  %v2298_v7 = vmul.f32 -1.442695, %v1205_v55 }
 0x76d   :  { %v2484_v62 = vpop.f32.mrf.mxu1 }
 0x76f   :  { %v1327_v60 = vpop.f32.mrf.mxu1 }
 0x770   :  { %v1333_v61 = vadd.f32 %v1327_v60, %v1285_v59 }
 0x771   :  { %v2499_v2 = vpop.f32.mrf.mxu1 }
 0x772   :  { %2655 = vtanh.f32 %v1333_v61  ;;  %v2302_v12 = vmul.f32 -1.442695, %v1333_v61 }
 0x773   :  { %v1330_v4 = vpop.f32.mrf.mxu1  ;;  %2657 = vpow2.f32 %v2298_v7 }
 0x774   :  { %2659 = vpow2.f32 %v2302_v12 }
 0x775   :  { %v2500_v6 = vpop.f32.mrf.mxu1 }
 0x779   :  { %v2654_v11 = vpop.eup %2653 }
 0x77a   :  { %1215 = vrot.lane.b32.xlu1 %v2654_v11, %s2934_s30 }
 0x77f   :  { %v2656_v57 = vpop.eup %2655 }
 0x780   :  { %1343 = vrot.lane.b32.xlu0 %v2656_v57, %s2934_s30  ;;  %v2658_v47 = vpop.eup %2657 }
 0x781   :  { %v1209_v13 = vadd.f32 1.0, %v2658_v47  ;;  %v2660_v10 = vpop.eup %2659 }
 0x782   :  { %v1337_v48 = vadd.f32 1.0, %v2660_v10 }
 0x783   :  { %2661 = vrcp.f32 %v1209_v13 }
 0x784   :  { %2663 = vrcp.f32 %v1337_v48 }
 0x790   :  { %v2662_v16 = vpop.eup %2661 }
 0x791   :  { %v2664_v17 = vpop.eup %2663  ;;  %v1213_v3 = vmul.f32 %v2662_v16, %v3279_v44  ;;  %v1230_v44 = vsub.f32 %v3296_v1, %v3291_v56 }
 0x792   :  { %v1341_v24 = vmul.f32 %v2664_v17, %v3283_v52 }
 0x793   :  { %vm1231_vm14 = vcmp.gt.f32.partialorder %v1230_v44, 0.0 }
 0x794   :  { %v2299_v31 = vsel %vm1231_vm14, 1.0, %v2942_v0 }
 0x795   :  { %v1234_v52 = vmul.f32 %v2299_v31, %v3291_v56  ;;  %v1519_v31 = vld [vmem:[#allocation2 + $0xc] sm:$0xf] }
 0x7ec   :  { %v1216_v14 = vpop.permute.xlu1 %1215 }
 0x7ed   :  { %v1218_v63 = vmul.f32 %v2662_v16, %v1216_v14 }
 0x7ef   :  { %1220 = vrot.lane.b32.xlu1 %v1218_v63, %s2945_s7 }
 0x7f2   :  { %v1344_v50 = vpop.permute.xlu0 %1343 }
 0x7f3   :  { %v1346_v22 = vmul.f32 %v2664_v17, %v1344_v50 }
 0x7f5   :  { %1348 = vrot.lane.b32.xlu0 %v1346_v22, %s2945_s7 }
 0x861   :  { %v1221_v18 = vpop.permute.xlu1 %1220 }
 0x862   :  { %v3343_v23 = vadd.f32 %v1221_v18, %v1213_v3 }
 0x864   :  { %2665 = vtanh.f32 %v3343_v23 }
 0x867   :  { %v1349_v26 = vpop.permute.xlu0 %1348 }
 0x868   :  { %v3347_v27 = vadd.f32 %v1349_v26, %v1341_v24 }
 0x86a   :  { %2667 = vtanh.f32 %v3347_v27 }
 0x871   :  { %v2666_v28 = vpop.eup %2665 }
 0x872   :  { %1226 = vrot.lane.b32.xlu1 %v2666_v28, %s2934_s30 }
 0x877   :  { %v2668_v30 = vpop.eup %2667 }
 0x878   :  { %1354 = vrot.lane.b32.xlu0 %v2668_v30, %s2934_s30 }
 0x8e4   :  { %v1227_v9 = vpop.permute.xlu1 %1226 }
 0x8e5   :  { %v1229_v32 = vmul.f32 %v2662_v16, %v1227_v9 }
 0x8e7   :  { %v3356_v33 = vsub.f32 %v1229_v32, %v1234_v52 }
 0x8e9   :  { %v1237_v5 = vpack.c.bf16 %v3356_v33, %v3356_v33 }
 0x8ea   :  { %v1355_v34 = vpop.permute.xlu0 %1354 }
 0x8eb   :  { %v1357_v37 = vmul.f32 %v2664_v17, %v1355_v34  ;;  %1239 = vrot.lane.b32.xlu0 %v1237_v5, %s2945_s7 }
 0x8ed   :  { %v1359_v29 = vsub.f32 %v1357_v37, %v1358_v36 }
 0x8ef   :  { %v1360_v38 = vsub.f32 %v1359_v29, %v3185_v35  ;;  %v1520_v60 = vpack.c.bf16 %v1359_v29, %v1359_v29 }
 0x8f1   :  { %vm1361_vm15 = vcmp.gt.f32.partialorder %v1360_v38, 0.0 }
 0x8f2   :  { %v3365_v39 = vsel %vm1361_vm15, 1.0, %v2942_v0 }
 0x8f3   :  { %v1364_v41 = vsel %vm881_vm2, %v3365_v39, 0.0 }
 0x8f4   :  { %v1365_v42 = vrot.slane %v1364_v41, 4 }
 0x8f6   :  { %v1366_v43 = vadd.f32 %v1365_v42, %v1364_v41 }
 0x8f8   :  { %v1367_v46 = vrot.slane %v1366_v43, 2 }
 0x8fa   :  { %v1368_v51 = vadd.f32 %v1367_v46, %v1366_v43 }
 0x8fc   :  { %v1369_v54 = vrot.slane %v1368_v51, 1 }
 0x8fe   :  { %v1370_v55 = vadd.f32 %v1369_v54, %v1368_v51 }
 0x900   :  { %v1371_v8 = vmul.f32 0.25, %v1370_v55 }
 0x902   :  { %v1372_v58 = vsub.f32 %v3365_v39, %v1371_v8 }
 0x904   :  { %1383 = vrot.lane.b32.xlu1 %v1372_v58, %s2945_s7  ;;  %v1373_v62 = vmul.f32 %v1372_v58, %v1372_v58 }
 0x906   :  { %v1374_v59 = vsel %vm881_vm2, %v1373_v62, 0.0 }
 0x907   :  { %v1375_v61 = vrot.slane %v1374_v59, 4 }
 0x908   :  { %1522 = vrot.lane.b32.xlu1 %v1520_v60, %s2945_s7 }
 0x909   :  { %v1376_v2 = vadd.f32 %v1375_v61, %v1374_v59 }
 0x90b   :  { %v1377_v4 = vrot.slane %v1376_v2, 2 }
 0x90d   :  { %v1378_v6 = vadd.f32 %v1377_v4, %v1376_v2 }
 0x90f   :  { %v1379_v11 = vrot.slane %v1378_v6, 1 }
 0x911   :  { %v1380_v57 = vadd.f32 %v1379_v11, %v1378_v6 }
 0x913   :  { %v1381_v7 = vmul.f32 0.25, %v1380_v57 }
 0x915   :  { %v1387_v12 = vadd.f32 1e-05, %v1381_v7 }
 0x917   :  { %2669 = vrsqrt.f32 %v1387_v12 }
 0x924   :  { %v2670_v47 = vpop.eup %2669 }
 0x925   :  { %1390 = vrot.lane.b32.xlu0 %v2670_v47, %s2945_s7 }
 0x95d   :  { %v1240_v13 = vpop.permute.xlu0 %1239 }
 0x95e   :  { %2490 = vmatmul.mubr.msk.bf16.vlgmr.msra.gmra.mxu0 %vm748_vm11, %v1240_v13  ;;  %v1236_v13 = vadd.f32 %v3356_v33, %v3296_v1 }
 0x95f   :  { %2502 = vmatpush3.bf16.msra.mxu0 %v3234_v40  ;;  %2505 = vmatprep.mubr.msk.bf16.mxu0 %vm2943_vm0, %v2942_v0 }
 0x960   :  { %2503 = vmatprep.subr.bf16.mxu0 %v2942_v0 }
 0x963   :  { %2504 = vmatpush3.bf16.msra.mxu0 %v3242_v45 }
 0x964   :  { %2517 = vmatprep.subr.bf16.mxu0 %v2942_v0 }
 0x976   :  { %v1384_v10 = vpop.permute.xlu1 %1383 }
 0x977   :  { %v1386_v48 = vmul.f32 %v3247_v21, %v1384_v10 }
 0x97a   :  { %v1523_v50 = vpop.permute.xlu1 %1522 }
 0x997   :  { %v1391_v16 = vpop.permute.xlu0 %1390 }
 0x998   :  { %v1393_v14 = vmul.f32 %v1391_v16, %v1386_v48 }
 0x99a   :  { %v1394_v63 = vadd.f32 %v3250_v53, %v1393_v14 }
 0x99c   :  { %v1395_v17 = vpack.c.bf16 %v1394_v63, %v1394_v63  ;;  %v1592_v63 = vmul.f32 %v3365_v39, %v3185_v35 }
 0x99e   :  { %2506 = vmatmul.mubr.msk.bf16.vlgmr.msra.gmra.mxu0 %vm748_vm11, %v1395_v17 }
 0x99f   :  { %2518 = vmatpush3.bf16.msra.mxu0 %v3138_v19  ;;  %2521 = vmatprep.mubr.msk.bf16.mxu0 %vm2943_vm0, %v2942_v0 }
 0x9a0   :  { %2519 = vmatprep.subr.bf16.mxu0 %v2942_v0 }
 0x9a3   :  { %2520 = vmatpush3.bf16.msra.mxu0 %v3142_v20 }
 0x9a4   :  { %2533 = vmatprep.subr.bf16.mxu0 %v2942_v0 }
 0x9a6   :  { %2522 = vmatmul.mubr.msk.bf16.vlgmr.msra.gmra.mxu0 %vm748_vm11, %v1523_v50 }
 0x9a7   :  { %2534 = vmatpush3.bf16.msra.mxu0 %v3202_v49  ;;  %2537 = vmatprep.mubr.msk.bf16.mxu0 %vm2943_vm0, %v2942_v0 }
 0x9a8   :  { %2535 = vmatprep.subr.bf16.mxu0 %v2942_v0 }
 0x9ab   :  { %2536 = vmatpush3.bf16.msra.mxu0 %v3211_v25 }
 0x9ac   :  { %2549 = vmatprep.subr.bf16.mxu0 %v2942_v0 }
 0xa1e   :  { %v1278_v19 = vpop.f32.mrf.mxu0 }
 0xa20   :  { %v2491_v22 = vpop.f32.mrf.mxu0 }
 0xa22   :  { %v1281_v3 = vpop.f32.mrf.mxu0 }
 0xa24   :  { %v2492_v20 = vpop.f32.mrf.mxu0 }
 0xa5e   :  { %v1433_v18 = vpop.f32.mrf.mxu0 }
 0xa5f   :  { %v1434_v24 = vadd.f32 %v1433_v18, %v1278_v19 }
 0xa60   :  { %v2507_v26 = vpop.f32.mrf.mxu0 }
 0xa61   :  { %v1439_v28 = vadd.f32 %v3272_v15, %v1434_v24 }
 0xa62   :  { %v1436_v30 = vpop.f32.mrf.mxu0 }
 0xa63   :  { %2671 = vtanh.f32 %v1439_v28  ;;  %v2305_v29 = vmul.f32 -1.442695, %v1439_v28 }
 0xa64   :  { %v2508_v44 = vpop.f32.mrf.mxu0 }
 0xa66   :  { %v1561_v9 = vpop.f32.mrf.mxu0 }
 0xa67   :  { %v1567_v52 = vadd.f32 %v1561_v9, %v1519_v31 }
 0xa68   :  { %v2523_v32 = vpop.f32.mrf.mxu0 }
 0xa69   :  { %2673 = vtanh.f32 %v1567_v52  ;;  %v2309_v38 = vmul.f32 -1.442695, %v1567_v52 }
 0xa6a   :  { %v1564_v5 = vpop.f32.mrf.mxu0  ;;  %2675 = vpow2.f32 %v2305_v29 }
 0xa6b   :  { %2677 = vpow2.f32 %v2309_v38 }
 0xa6c   :  { %v2524_v34 = vpop.f32.mrf.mxu0 }
 0xa70   :  { %v2672_v36 = vpop.eup %2671 }
 0xa71   :  { %1449 = vrot.lane.b32.xlu1 %v2672_v36, %s2934_s30 }
 0xa76   :  { %v2674_v37 = vpop.eup %2673 }
 0xa77   :  { %1577 = vrot.lane.b32.xlu0 %v2674_v37, %s2934_s30  ;;  %v2676_v41 = vpop.eup %2675 }
 0xa78   :  { %v1443_v42 = vadd.f32 1.0, %v2676_v41  ;;  %v2678_v43 = vpop.eup %2677 }
 0xa79   :  { %v1571_v46 = vadd.f32 1.0, %v2678_v43 }
 0xa7a   :  { %2679 = vrcp.f32 %v1443_v42 }
 0xa7b   :  { %2681 = vrcp.f32 %v1571_v46 }
 0xa87   :  { %v2680_v51 = vpop.eup %2679 }
 0xa88   :  { %v2682_v8 = vpop.eup %2681  ;;  %v1447_v59 = vmul.f32 %v2680_v51, %v3343_v23  ;;  %v1464_v23 = vsub.f32 %v3356_v33, %v3291_v56 }
 0xa89   :  { %v1575_v2 = vmul.f32 %v2682_v8, %v3347_v27 }
 0xa8a   :  { %vm1465_vm1 = vcmp.gt.f32.partialorder %v1464_v23, 0.0 }
 0xa8b   :  { %v2306_v7 = vsel %vm1465_vm1, 1.0, %v2942_v0 }
 0xa8c   :  { %v1468_v27 = vmul.f32 %v2306_v7, %v3291_v56 }
 0xae3   :  { %v1450_v54 = vpop.permute.xlu1 %1449 }
 0xae4   :  { %v1452_v55 = vmul.f32 %v2680_v51, %v1450_v54 }
 0xae6   :  { %1454 = vrot.lane.b32.xlu1 %v1452_v55, %s2945_s7 }
 0xae9   :  { %v1578_v58 = vpop.permute.xlu0 %1577 }
 0xaea   :  { %v1580_v62 = vmul.f32 %v2682_v8, %v1578_v58  ;;  %v3455_v58 = vld [vmem:[#allocation10] sm:$0xff]  }
 0xaec   :  { %1582 = vrot.lane.b32.xlu0 %v1580_v62, %s2945_s7 }
 0xb58   :  { %v1455_v60 = vpop.permute.xlu1 %1454 }
 0xb59   :  { %v3403_v61 = vadd.f32 %v1455_v60, %v1447_v59 }
 0xb5b   :  { %2683 = vtanh.f32 %v3403_v61 }
 0xb5e   :  { %v1583_v4 = vpop.permute.xlu0 %1582 }
 0xb5f   :  { %v3407_v6 = vadd.f32 %v1583_v4, %v1575_v2 }
 0xb61   :  { %2685 = vtanh.f32 %v3407_v6 }
 0xb68   :  { %v2684_v11 = vpop.eup %2683 }
 0xb69   :  { %1460 = vrot.lane.b32.xlu1 %v2684_v11, %s2934_s30 }
 0xb6e   :  { %v2686_v57 = vpop.eup %2685 }
 0xb6f   :  { %1588 = vrot.lane.b32.xlu0 %v2686_v57, %s2934_s30 }
 0xbdb   :  { %v1461_v12 = vpop.permute.xlu1 %1460 }
 0xbdc   :  { %v1463_v47 = vmul.f32 %v2680_v51, %v1461_v12 }
 0xbde   :  { %v3418_v10 = vsub.f32 %v1463_v47, %v1468_v27  ;;  %v1753_v27 = vld [vmem:[#allocation2 + $0x10] sm:$0xf] }
 0xbe0   :  { %v3421_v48 = vadd.f32 %v3418_v10, %v1236_v13  ;;  %v1471_v16 = vpack.c.bf16 %v3418_v10, %v3418_v10 }
 0xbe1   :  { %v1589_v14 = vpop.permute.xlu0 %1588 }
 0xbe2   :  { %v1591_v17 = vmul.f32 %v2682_v8, %v1589_v14  ;;  %1473 = vrot.lane.b32.xlu0 %v1471_v16, %s2945_s7  ;;  %v3449_v8 = vld [vmem:[#allocation10 + $0x8] sm:$0xff]  }
 0xbe4   :  { %v1593_v50 = vsub.f32 %v1591_v17, %v1592_v63 }
 0xbe6   :  { %v1594_v19 = vsub.f32 %v1593_v50, %v3185_v35  ;;  %v1754_v31 = vpack.c.bf16 %v1593_v50, %v1593_v50 }
 0xbe8   :  { %vm1595_vm3 = vcmp.gt.f32.partialorder %v1594_v19, 0.0 }
 0xbe9   :  { %v3430_v1 = vsel %vm1595_vm3, 1.0, %v2942_v0 }
 0xbea   :  { %v1598_v33 = vsel %vm881_vm2, %v3430_v1, 0.0 }
 0xbeb   :  { %v1599_v22 = vrot.slane %v1598_v33, 4 }
 0xbed   :  { %v1600_v3 = vadd.f32 %v1599_v22, %v1598_v33 }
 0xbef   :  { %v1601_v20 = vrot.slane %v1600_v3, 2 }
 0xbf1   :  { %v1602_v18 = vadd.f32 %v1601_v20, %v1600_v3 }
 0xbf3   :  { %v1603_v24 = vrot.slane %v1602_v18, 1 }
 0xbf5   :  { %v1604_v26 = vadd.f32 %v1603_v24, %v1602_v18 }
 0xbf7   :  { %v1605_v39 = vmul.f32 0.25, %v1604_v26 }
 0xbf9   :  { %v1606_v28 = vsub.f32 %v3430_v1, %v1605_v39 }
 0xbfb   :  { %1617 = vrot.lane.b32.xlu1 %v1606_v28, %s2945_s7  ;;  %v1607_v30 = vmul.f32 %v1606_v28, %v1606_v28 }
 0xbfd   :  { %v1608_v44 = vsel %vm881_vm2, %v1607_v30, 0.0 }
 0xbfe   :  { %v1609_v9 = vrot.slane %v1608_v44, 4 }
 0xbff   :  { %1756 = vrot.lane.b32.xlu1 %v1754_v31, %s2945_s7 }
 0xc00   :  { %v1610_v52 = vadd.f32 %v1609_v9, %v1608_v44 }
 0xc02   :  { %v1611_v32 = vrot.slane %v1610_v52, 2 }
 0xc04   :  { %v1612_v5 = vadd.f32 %v1611_v32, %v1610_v52 }
 0xc06   :  { %v1613_v34 = vrot.slane %v1612_v5, 1 }
 0xc08   :  { %v1614_v36 = vadd.f32 %v1613_v34, %v1612_v5 }
 0xc0a   :  { %v1615_v37 = vmul.f32 0.25, %v1614_v36 }
 0xc0c   :  { %v1621_v29 = vadd.f32 1e-05, %v1615_v37 }
 0xc0e   :  { %2687 = vrsqrt.f32 %v1621_v29 }
 0xc1b   :  { %v2688_v38 = vpop.eup %2687 }
 0xc1c   :  { %1624 = vrot.lane.b32.xlu0 %v2688_v38, %s2945_s7 }
 0xc54   :  { %v1474_v41 = vpop.permute.xlu0 %1473 }
 0xc55   :  { %2514 = vmatmul.mubr.msk.bf16.vlgmr.msra.gmra.mxu1 %vm748_vm11, %v1474_v41 }
 0xc56   :  { %2526 = vmatpush3.bf16.msra.mxu1 %v3234_v40  ;;  %2529 = vmatprep.mubr.msk.bf16.mxu1 %vm2943_vm0, %v2942_v0 }
 0xc57   :  { %2527 = vmatprep.subr.bf16.mxu1 %v2942_v0 }
 0xc5a   :  { %2528 = vmatpush3.bf16.msra.mxu1 %v3242_v45 }
 0xc5b   :  { %2541 = vmatprep.subr.bf16.mxu1 %v2942_v0 }
 0xc6d   :  { %v1618_v42 = vpop.permute.xlu1 %1617 }
 0xc6e   :  { %v1620_v43 = vmul.f32 %v3247_v21, %v1618_v42 }
 0xc71   :  { %v1757_v62 = vpop.permute.xlu1 %1756 }
 0xc8e   :  { %v1625_v46 = vpop.permute.xlu0 %1624 }
 0xc8f   :  { %v1627_v51 = vmul.f32 %v1625_v46, %v1620_v43 }
 0xc91   :  { %v1628_v54 = vadd.f32 %v3250_v53, %v1627_v51 }
 0xc93   :  { %v1629_v55 = vpack.c.bf16 %v1628_v54, %v1628_v54 }
 0xc95   :  { %2530 = vmatmul.mubr.msk.bf16.vlgmr.msra.gmra.mxu1 %vm748_vm11, %v1629_v55 }
 0xc96   :  { %2542 = vmatpush3.bf16.msra.mxu1 %v3449_v8  ;;  %2545 = vmatprep.mubr.msk.bf16.mxu1 %vm2943_vm0, %v2942_v0 }
 0xc97   :  { %2543 = vmatprep.subr.bf16.mxu1 %v2942_v0 }
 0xc9a   :  { %2544 = vmatpush3.bf16.msra.mxu1 %v3455_v58 }
 0xc9b   :  { %2557 = vmatprep.subr.bf16.mxu1 %v2942_v0 }
 0xc9d   :  { %2546 = vmatmul.mubr.msk.bf16.vlgmr.msra.gmra.mxu1 %vm748_vm11, %v1757_v62 }
 0xc9e   :  { %2558 = vmatpush3.bf16.msra.mxu1 %v3202_v49  ;;  %2561 = vmatprep.mubr.msk.bf16.mxu1 %vm2943_vm0, %v2942_v0 }
 0xc9f   :  { %2559 = vmatprep.subr.bf16.mxu1 %v2942_v0 }
 0xca2   :  { %2560 = vmatpush3.bf16.msra.mxu1 %v3211_v25 }
 0xca3   :  { %2573 = vmatprep.subr.bf16.mxu1 %v2942_v0 }
 0xd15   :  { %v1512_v59 = vpop.f32.mrf.mxu1 }
 0xd17   :  { %v2515_v60 = vpop.f32.mrf.mxu1 }
 0xd19   :  { %v1515_v2 = vpop.f32.mrf.mxu1 }
 0xd1b   :  { %v2516_v4 = vpop.f32.mrf.mxu1 }
 0xd55   :  { %v1667_v11 = vpop.f32.mrf.mxu1 }
 0xd56   :  { %v1668_v57 = vadd.f32 %v1667_v11, %v1512_v59 }
 0xd57   :  { %v2531_v23 = vpop.f32.mrf.mxu1 }
 0xd58   :  { %v1673_v7 = vadd.f32 %v3272_v15, %v1668_v57 }
 0xd59   :  { %v1670_v12 = vpop.f32.mrf.mxu1 }
 0xd5a   :  { %2689 = vtanh.f32 %v1673_v7  ;;  %v2312_v50 = vmul.f32 -1.442695, %v1673_v7 }
 0xd5b   :  { %v2532_v49 = vpop.f32.mrf.mxu1 }
 0xd5d   :  { %v1795_v47 = vpop.f32.mrf.mxu1 }
 0xd5e   :  { %v1801_v13 = vadd.f32 %v1795_v47, %v1753_v27 }
 0xd5f   :  { %v2547_v16 = vpop.f32.mrf.mxu1 }
 0xd60   :  { %2691 = vtanh.f32 %v1801_v13  ;;  %v2316_v19 = vmul.f32 -1.442695, %v1801_v13 }
 0xd61   :  { %v1798_v25 = vpop.f32.mrf.mxu1  ;;  %2693 = vpow2.f32 %v2312_v50 }
 0xd62   :  { %2695 = vpow2.f32 %v2316_v19 }
 0xd63   :  { %v2548_v14 = vpop.f32.mrf.mxu1 }
 0xd67   :  { %v2690_v63 = vpop.eup %2689 }
 0xd68   :  { %1683 = vrot.lane.b32.xlu1 %v2690_v63, %s2934_s30 }
 0xd6d   :  { %v2692_v17 = vpop.eup %2691 }
 0xd6e   :  { %1811 = vrot.lane.b32.xlu0 %v2692_v17, %s2934_s30  ;;  %v2694_v33 = vpop.eup %2693 }
 0xd6f   :  { %v1677_v22 = vadd.f32 1.0, %v2694_v33  ;;  %v2696_v3 = vpop.eup %2695 }
 0xd70   :  { %v1805_v20 = vadd.f32 1.0, %v2696_v3 }
 0xd71   :  { %2697 = vrcp.f32 %v1677_v22 }
 0xd72   :  { %2699 = vrcp.f32 %v1805_v20 }
 0xd7e   :  { %v2698_v18 = vpop.eup %2697 }
 0xd7f   :  { %v2700_v39 = vpop.eup %2699  ;;  %v1681_v44 = vmul.f32 %v2698_v18, %v3403_v61  ;;  %v1698_v61 = vsub.f32 %v3418_v10, %v3291_v56  ;;  %v1826_v10 = vmul.f32 %v3430_v1, %v3185_v35 }
 0xd80   :  { %v1809_v52 = vmul.f32 %v2700_v39, %v3407_v6 }
 0xd81   :  { %vm1699_vm4 = vcmp.gt.f32.partialorder %v1698_v61, 0.0 }
 0xd82   :  { %v2313_v37 = vsel %vm1699_vm4, 1.0, %v2942_v0 }
 0xd83   :  { %v1702_v6 = vmul.f32 %v2313_v37, %v3291_v56 }
 0xdda   :  { %v1684_v24 = vpop.permute.xlu1 %1683 }
 0xddb   :  { %v1686_v26 = vmul.f32 %v2698_v18, %v1684_v24 }
 0xddd   :  { %1688 = vrot.lane.b32.xlu1 %v1686_v26, %s2945_s7 }
 0xde0   :  { %v1812_v28 = vpop.permute.xlu0 %1811 }
 0xde1   :  { %v1814_v30 = vmul.f32 %v2700_v39, %v1812_v28 }
 0xde3   :  { %1816 = vrot.lane.b32.xlu0 %v1814_v30, %s2945_s7 }
 0xe4f   :  { %v1689_v31 = vpop.permute.xlu1 %1688 }
 0xe50   :  { %v3472_v9 = vadd.f32 %v1689_v31, %v1681_v44  ;;  %v1987_v31 = vld [vmem:[#allocation2 + $0x14] sm:$0xf] }
 0xe52   :  { %2701 = vtanh.f32 %v3472_v9 }
 0xe55   :  { %v1817_v32 = vpop.permute.xlu0 %1816 }
 0xe56   :  { %v3476_v5 = vadd.f32 %v1817_v32, %v1809_v52 }
 0xe58   :  { %2703 = vtanh.f32 %v3476_v5 }
 0xe5f   :  { %v2702_v34 = vpop.eup %2701 }
 0xe60   :  { %1694 = vrot.lane.b32.xlu1 %v2702_v34, %s2934_s30 }
 0xe65   :  { %v2704_v36 = vpop.eup %2703 }
 0xe66   :  { %1822 = vrot.lane.b32.xlu0 %v2704_v36, %s2934_s30 }
 0xed2   :  { %v1695_v29 = vpop.permute.xlu1 %1694 }
 0xed3   :  { %v1697_v38 = vmul.f32 %v2698_v18, %v1695_v29 }
 0xed5   :  { %v3485_v41 = vsub.f32 %v1697_v38, %v1702_v6 }
 0xed7   :  { %v3489_v42 = vadd.f32 %v3485_v41, %v3421_v48  ;;  %v1705_v43 = vpack.c.bf16 %v3485_v41, %v3485_v41 }
 0xed8   :  { %v1823_v46 = vpop.permute.xlu0 %1822 }
 0xed9   :  { %v1825_v51 = vmul.f32 %v2700_v39, %v1823_v46  ;;  %1707 = vrot.lane.b32.xlu0 %v1705_v43, %s2945_s7 }
 0xedb   :  { %v1827_v54 = vsub.f32 %v1825_v51, %v1826_v10 }
 0xedd   :  { %v1828_v55 = vsub.f32 %v1827_v54, %v3185_v35  ;;  %v1988_v49 = vpack.c.bf16 %v1827_v54, %v1827_v54 }
 0xedf   :  { %vm1829_vm5 = vcmp.gt.f32.partialorder %v1828_v55, 0.0 }
 0xee0   :  { %v3498_v62 = vsel %vm1829_vm5, 1.0, %v2942_v0 }
 0xee1   :  { %v1832_v48 = vsel %vm881_vm2, %v3498_v62, 0.0 }
 0xee2   :  { %v1833_v59 = vrot.slane %v1832_v48, 4 }
 0xee4   :  { %v1834_v60 = vadd.f32 %v1833_v59, %v1832_v48 }
 0xee6   :  { %v1835_v2 = vrot.slane %v1834_v60, 2 }
 0xee8   :  { %v1836_v4 = vadd.f32 %v1835_v2, %v1834_v60 }
 0xeea   :  { %v1837_v11 = vrot.slane %v1836_v4, 1 }
 0xeec   :  { %v1838_v57 = vadd.f32 %v1837_v11, %v1836_v4 }
 0xeee   :  { %v1839_v1 = vmul.f32 0.25, %v1838_v57 }
 0xef0   :  { %v1840_v23 = vsub.f32 %v3498_v62, %v1839_v1 }
 0xef2   :  { %1851 = vrot.lane.b32.xlu1 %v1840_v23, %s2945_s7  ;;  %v1841_v7 = vmul.f32 %v1840_v23, %v1840_v23 }
 0xef4   :  { %v1842_v12 = vsel %vm881_vm2, %v1841_v7, 0.0 }
 0xef5   :  { %v1843_v27 = vrot.slane %v1842_v12, 4 }
 0xef6   :  { %1990 = vrot.lane.b32.xlu1 %v1988_v49, %s2945_s7  ;;  %v1932_v49 = vsub.f32 %v3485_v41, %v3291_v56  ;;  %v2060_v41 = vmul.f32 %v3498_v62, %v3185_v35 }
 0xef7   :  { %v1844_v47 = vadd.f32 %v1843_v27, %v1842_v12 }
 0xef8   :  { %vm1933_vm6 = vcmp.gt.f32.partialorder %v1932_v49, 0.0 }
 0xef9   :  { %v1845_v13 = vrot.slane %v1844_v47, 2 }
 0xefb   :  { %v1846_v16 = vadd.f32 %v1845_v13, %v1844_v47 }
 0xefd   :  { %v1847_v25 = vrot.slane %v1846_v16, 1 }
 0xeff   :  { %v1848_v14 = vadd.f32 %v1847_v25, %v1846_v16 }
 0xf01   :  { %v1849_v63 = vmul.f32 0.25, %v1848_v14 }
 0xf03   :  { %v1855_v17 = vadd.f32 1e-05, %v1849_v63 }
 0xf05   :  { %2705 = vrsqrt.f32 %v1855_v17 }
 0xf12   :  { %v2706_v50 = vpop.eup %2705 }
 0xf13   :  { %1858 = vrot.lane.b32.xlu0 %v2706_v50, %s2945_s7 }
 0xf4b   :  { %v1708_v19 = vpop.permute.xlu0 %1707 }
 0xf4c   :  { %2538 = vmatmul.mubr.msk.bf16.vlgmr.msra.gmra.mxu0 %vm748_vm11, %v1708_v19 }
 0xf4d   :  { %2550 = vmatpush3.bf16.msra.mxu0 %v3234_v40  ;;  %2553 = vmatprep.mubr.msk.bf16.mxu0 %vm2943_vm0, %v2942_v0 }
 0xf4e   :  { %2551 = vmatprep.subr.bf16.mxu0 %v2942_v0 }
 0xf51   :  { %2552 = vmatpush3.bf16.msra.mxu0 %v3242_v45 }
 0xf52   :  { %2565 = vmatprep.subr.bf16.mxu0 %v2942_v0 }
 0xf64   :  { %v1852_v33 = vpop.permute.xlu1 %1851 }
 0xf65   :  { %v1854_v22 = vmul.f32 %v3247_v21, %v1852_v33 }
 0xf68   :  { %v1991_v40 = vpop.permute.xlu1 %1990 }
 0xf85   :  { %v1859_v3 = vpop.permute.xlu0 %1858 }
 0xf86   :  { %v1861_v20 = vmul.f32 %v1859_v3, %v1854_v22 }
 0xf88   :  { %v1862_v18 = vadd.f32 %v3250_v53, %v1861_v20 }
 0xf8a   :  { %v1863_v24 = vpack.c.bf16 %v1862_v18, %v1862_v18 }
 0xf8c   :  { %2554 = vmatmul.mubr.msk.bf16.vlgmr.msra.gmra.mxu0 %vm748_vm11, %v1863_v24 }
 0xf8d   :  { %2566 = vmatpush3.bf16.msra.mxu0 %v3449_v8  ;;  %2569 = vmatprep.mubr.msk.bf16.mxu0 %vm2943_vm0, %v2942_v0 }
 0xf8e   :  { %2567 = vmatprep.subr.bf16.mxu0 %v2942_v0 }
 0xf91   :  { %2568 = vmatpush3.bf16.msra.mxu0 %v3455_v58 }
 0xf92   :  { %2581 = vmatprep.subr.bf16.mxu0 %v2942_v0 }
 0xf94   :  { %2570 = vmatmul.mubr.msk.bf16.vlgmr.msra.gmra.mxu0 %vm748_vm11, %v1991_v40 }
 0xf95   :  { %2585 = vmatprep.mubr.msk.bf16.mxu0 %vm2943_vm0, %v2942_v0 }
0x100c   :  { %v1746_v45 = vpop.f32.mrf.mxu0 }
0x100e   :  { %v2539_v21 = vpop.f32.mrf.mxu0 }
0x1010   :  { %v1749_v53 = vpop.f32.mrf.mxu0 }
0x1012   :  { %v2540_v26 = vpop.f32.mrf.mxu0 }
0x104c   :  { %v1901_v8 = vpop.f32.mrf.mxu0 }
0x104d   :  { %v1902_v39 = vadd.f32 %v1901_v8, %v1746_v45 }
0x104e   :  { %v2555_v28 = vpop.f32.mrf.mxu0 }
0x104f   :  { %v1907_v30 = vadd.f32 %v3272_v15, %v1902_v39 }
0x1050   :  { %v1904_v44 = vpop.f32.mrf.mxu0 }
0x1051   :  { %2707 = vtanh.f32 %v1907_v30  ;;  %v2319_v6 = vmul.f32 -1.442695, %v1907_v30 }
0x1052   :  { %v2556_v58 = vpop.f32.mrf.mxu0 }
0x1054   :  { %v2029_v52 = vpop.f32.mrf.mxu0 }
0x1055   :  { %v2035_v32 = vadd.f32 %v2029_v52, %v1987_v31  ;;  %v2735_v52 = vld [vmem:[#allocation16 + $0x8] sm:$0xff]  }
0x1056   :  { %v2571_v34 = vpop.f32.mrf.mxu0 }
0x1057   :  { %2709 = vtanh.f32 %v2035_v32  ;;  %v2323_v38 = vmul.f32 -1.442695, %v2035_v32  ;;  %v2736_v32 = vld [vmem:[#allocation16] sm:$0xff]  }
0x1058   :  { %v2032_v36 = vpop.f32.mrf.mxu0  ;;  %2711 = vpow2.f32 %v2319_v6  ;;  %v2738_v6 = vld [vmem:[#allocation14] ss:$0 sm:$0xff] }
0x1059   :  { %2713 = vpow2.f32 %v2323_v38  ;;  %v2737_v36 = vld [vmem:[#allocation13] ss:$0 sm:$0xff] }
0x105a   :  { %v2572_v61 = vpop.f32.mrf.mxu0 }
0x105e   :  { %v2708_v37 = vpop.eup %2707 }
0x105f   :  { %1917 = vrot.lane.b32.xlu1 %v2708_v37, %s2934_s30 }
0x1064   :  { %v2710_v29 = vpop.eup %2709 }
0x1065   :  { %2045 = vrot.lane.b32.xlu0 %v2710_v29, %s2934_s30  ;;  %v2712_v15 = vpop.eup %2711 }
0x1066   :  { %v1911_v43 = vadd.f32 1.0, %v2712_v15  ;;  %v2714_v46 = vpop.eup %2713 }
0x1067   :  { %v2039_v10 = vadd.f32 1.0, %v2714_v46 }
0x1068   :  { %2715 = vrcp.f32 %v1911_v43 }
0x1069   :  { %2717 = vrcp.f32 %v2039_v10 }
0x1075   :  { %v2716_v51 = vpop.eup %2715 }
0x1076   :  { %v2718_v48 = vpop.eup %2717  ;;  %v1915_v2 = vmul.f32 %v2716_v51, %v3472_v9  ;;  %v2320_v9 = vsel %vm1933_vm6, 1.0, %v2942_v0 }
0x1077   :  { %v2043_v57 = vmul.f32 %v2718_v48, %v3476_v5  ;;  %v1936_v47 = vmul.f32 %v2320_v9, %v3291_v56 }
0x10d1   :  { %v1918_v54 = vpop.permute.xlu1 %1917 }
0x10d2   :  { %v1920_v55 = vmul.f32 %v2716_v51, %v1918_v54 }
0x10d4   :  { %1922 = vrot.lane.b32.xlu1 %v1920_v55, %s2945_s7 }
0x10d7   :  { %v2046_v59 = vpop.permute.xlu0 %2045 }
0x10d8   :  { %v2048_v60 = vmul.f32 %v2718_v48, %v2046_v59  ;;  %v2739_v59 = vld [vmem:[%s3594_s9] ss:$0 sm:$0xff] }
0x10da   :  { %2050 = vrot.lane.b32.xlu0 %v2048_v60, %s2945_s7 }
0x1146   :  { %v1923_v4 = vpop.permute.xlu1 %1922 }
0x1147   :  { %v3532_v11 = vadd.f32 %v1923_v4, %v1915_v2 }
0x1149   :  { %2719 = vtanh.f32 %v3532_v11 }
0x114c   :  { %v2051_v1 = vpop.permute.xlu0 %2050 }
0x114d   :  { %v2053_v23 = vadd.f32 %v2051_v1, %v2043_v57 }
0x114f   :  { %2721 = vtanh.f32 %v2053_v23 }
0x1156   :  { %v2720_v7 = vpop.eup %2719 }
0x1157   :  { %1928 = vrot.lane.b32.xlu1 %v2720_v7, %s2934_s30 }
0x115c   :  { %v2722_v12 = vpop.eup %2721 }
0x115d   :  { %2056 = vrot.lane.b32.xlu0 %v2722_v12, %s2934_s30 }
0x11c9   :  { %v1929_v27 = vpop.permute.xlu1 %1928 }
0x11ca   :  { %v1931_v13 = vmul.f32 %v2716_v51, %v1929_v27 }
0x11cc   :  { %v3542_v5 = vsub.f32 %v1931_v13, %v1936_v47 }
0x11ce   :  { %v1939_v16 = vpack.c.bf16 %v3542_v5, %v3542_v5  ;;  %v3548_v25 = vadd.f32 %v3542_v5, %v3489_v42 }
0x11cf   :  { %v2057_v14 = vpop.permute.xlu0 %2056 }
0x11d0   :  { %v2059_v63 = vmul.f32 %v2718_v48, %v2057_v14  ;;  %1941 = vrot.lane.b32.xlu0 %v1939_v16, %s2945_s7  ;;  %v2611_v16 = vld [vmem:[#allocation17 + $0x8] sm:$0xff]  }
0x11d1   :  { %2582 = vmatpush3.bf16.msra.mxu0 %v2611_v16 }
0x11d2   :  { %v2061_v17 = vsub.f32 %v2059_v63, %v2060_v41  ;;  %v2612_v41 = vld [vmem:[#allocation17] sm:$0xff]   ;;  %2583 = vmatprep.subr.bf16.mxu0 %v2942_v0  ;;  %v2166_v63 = vsub.f32 %v3542_v5, %v3291_v56 }
0x11d3   :  { %v2328_v5 = vld [vmem:[%s3597_s12] ss:$0 sm:$0xff] }
0x11d4   :  { %v2062_v50 = vsub.f32 %v2061_v17, %v3185_v35 }
0x11d5   :  { %2584 = vmatpush3.bf16.msra.mxu0 %v2612_v41 }
0x11d6   :  { %vm2063_vm7 = vcmp.gt.f32.partialorder %v2062_v50, 0.0 }
0x11d7   :  { %v2324_v19 = vsel %vm2063_vm7, 1.0, %v2942_v0 }
0x11d8   :  { %v2066_v33 = vsel %vm881_vm2, %v2324_v19, 0.0 }
0x11d9   :  { %v2067_v22 = vrot.slane %v2066_v33, 4 }
0x11db   :  { %v2068_v3 = vadd.f32 %v2067_v22, %v2066_v33 }
0x11dd   :  { %v2069_v20 = vrot.slane %v2068_v3, 2 }
0x11df   :  { %v2070_v42 = vadd.f32 %v2069_v20, %v2068_v3 }
0x11e1   :  { %v2071_v18 = vrot.slane %v2070_v42, 1 }
0x11e3   :  { %v2072_v24 = vadd.f32 %v2071_v18, %v2070_v42 }
0x11e5   :  { %v2073_v40 = vmul.f32 0.25, %v2072_v24 }
0x11e7   :  { %v2074_v45 = vsub.f32 %v2324_v19, %v2073_v40 }
0x11e9   :  { %2085 = vrot.lane.b32.xlu1 %v2074_v45, %s2945_s7  ;;  %v2075_v62 = vmul.f32 %v2074_v45, %v2074_v45 }
0x11eb   :  { %v2076_v21 = vsel %vm881_vm2, %v2075_v62, 0.0 }
0x11ec   :  { %v2077_v53 = vrot.slane %v2076_v21, 4 }
0x11ee   :  { %v2078_v35 = vadd.f32 %v2077_v53, %v2076_v21 }
0x11f0   :  { %v2079_v26 = vrot.slane %v2078_v35, 2 }
0x11f2   :  { %v2080_v8 = vadd.f32 %v2079_v26, %v2078_v35 }
0x11f4   :  { %v2081_v39 = vrot.slane %v2080_v8, 1 }
0x11f6   :  { %v2082_v28 = vadd.f32 %v2081_v39, %v2080_v8 }
0x11f8   :  { %v2083_v30 = vmul.f32 0.25, %v2082_v28 }
0x11fa   :  { %v2089_v44 = vadd.f32 1e-05, %v2083_v30 }
0x11fc   :  { %2723 = vrsqrt.f32 %v2089_v44 }
0x1209   :  { %v2724_v58 = vpop.eup %2723 }
0x120a   :  { %2092 = vrot.lane.b32.xlu0 %v2724_v58, %s2945_s7 }
0x1242   :  { %v1942_v31 = vpop.permute.xlu0 %1941 }
0x1243   :  { %2562 = vmatmul.mubr.msk.bf16.vlgmr.msra.gmra.mxu1 %vm748_vm11, %v1942_v31 }
0x1244   :  { %2574 = vmatpush3.bf16.msra.mxu1 %v2735_v52  ;;  %2577 = vmatprep.mubr.msk.bf16.mxu1 %vm2943_vm0, %v2942_v0  ;;  %vm2167_vm0 = vcmp.gt.f32.partialorder %v2166_v63, 0.0 }
0x1245   :  { %2575 = vmatprep.subr.bf16.mxu1 %v2942_v0  ;;  %v2327_v17 = vsel %vm2167_vm0, 1.0, %v2942_v0 }
0x1248   :  { %2576 = vmatpush3.bf16.msra.mxu1 %v2736_v32 }
0x125b   :  { %v2086_v34 = vpop.permute.xlu1 %2085 }
0x125c   :  { %v2088_v61 = vmul.f32 %v2737_v36, %v2086_v34 }
0x127c   :  { %v2093_v37 = vpop.permute.xlu0 %2092 }
0x127d   :  { %v2095_v29 = vmul.f32 %v2093_v37, %v2088_v61 }
0x127f   :  { %v2096_v38 = vadd.f32 %v2738_v6, %v2095_v29 }
0x1281   :  { %v2097_v15 = vpack.c.bf16 %v2096_v38, %v2096_v38 }
0x1283   :  { %2578 = vmatmul.mubr.msk.bf16.vlgmr.msra.gmra.mxu1 %vm748_vm11, %v2097_v15 }
0x1303   :  { %v1980_v43 = vpop.f32.mrf.mxu1 }
0x1305   :  { %v2563_v46 = vpop.f32.mrf.mxu1 }
0x1307   :  { %v1983_v10 = vpop.f32.mrf.mxu1 }
0x1309   :  { %v2564_v51 = vpop.f32.mrf.mxu1 }
0x1343   :  { %v2135_v54 = vpop.f32.mrf.mxu1 }
0x1344   :  { %v2136_v55 = vadd.f32 %v2135_v54, %v1980_v43 }
0x1345   :  { %v2579_v48 = vpop.f32.mrf.mxu1 }
0x1346   :  { %v2141_v60 = vadd.f32 %v2739_v59, %v2136_v55 }
0x1347   :  { %v2138_v2 = vpop.f32.mrf.mxu1 }
0x1348   :  { %2725 = vtanh.f32 %v2141_v60  ;;  %v2326_v1 = vmul.f32 -1.442695, %v2141_v60 }
0x1349   :  { %v2580_v4 = vpop.f32.mrf.mxu1 }
0x134a   :  { %2727 = vpow2.f32 %v2326_v1 }
0x1355   :  { %v2726_v57 = vpop.eup %2725 }
0x1356   :  { %2151 = vrot.lane.b32.xlu1 %v2726_v57, %s2934_s30 }
0x1357   :  { %v2728_v23 = vpop.eup %2727 }
0x1358   :  { %v2145_v7 = vadd.f32 1.0, %v2728_v23 }
0x135a   :  { %2729 = vrcp.f32 %v2145_v7 }
0x1367   :  { %v2730_v12 = vpop.eup %2729 }
0x1368   :  { %v2149_v27 = vmul.f32 %v2730_v12, %v3532_v11  ;;  %v2170_v11 = vmul.f32 %v2327_v17, %v3291_v56 }
0x13c8   :  { %v2152_v49 = vpop.permute.xlu1 %2151 }
0x13c9   :  { %v2154_v9 = vmul.f32 %v2730_v12, %v2152_v49 }
0x13cb   :  { %2156 = vrot.lane.b32.xlu0 %v2154_v9, %s2945_s7 }
0x143d   :  { %v2157_v47 = vpop.permute.xlu0 %2156 }
0x143e   :  { %v2159_v13 = vadd.f32 %v2157_v47, %v2149_v27 }
0x1440   :  { %2731 = vtanh.f32 %v2159_v13 }
0x144d   :  { %v2732_v14 = vpop.eup %2731 }
0x144e   :  { %2162 = vrot.lane.b32.xlu1 %v2732_v14, %s2934_s30 }
0x14c0   :  { %v2163_v50 = vpop.permute.xlu1 %2162 }
0x14c1   :  { %v2165_v19 = vmul.f32 %v2730_v12, %v2163_v50 }
0x14c3   :  { %v2171_v33 = vsub.f32 %v2165_v19, %v2170_v11 }
0x14c5   :  { %v2172_v22 = vadd.f32 %v2171_v33, %v3548_v25 }
0x14c7   :  { %v2173_v3 = vmul.f32 0.16666667, %v2172_v22 }
0x14c9   :  { %v2174_v20 = vpack.c.bf16 %v2173_v3, %v2173_v3 }
0x14cb   :  { %2187 = vrot.lane.b32.xlu0 %v2174_v20, %s2945_s7 }
0x153d   :  { %v2188_v42 = vpop.permute.xlu0 %2187 }
0x153e   :  { %2586 = vmatmul.mubr.msk.bf16.vlgmr.msra.gmra.mxu0 %vm748_vm11, %v2188_v42 }
0x15fe   :  { %v2238_v0 = vpop.f32.mrf.mxu0 }
0x15ff   :  { %v2239_v18 = vadd.f32 %v2328_v5, %v2238_v0 }
0x1600   :  { %v2587_v56 = vpop.f32.mrf.mxu0 }
0x1601   :  { %2244 = vst [vmem:[#allocation19] sm:$0xf] %v2239_v18 }
0x1602   :  { %v2241_v24 = vpop.f32.mrf.mxu0 }
0x1603   :  { %2911 = shalt.err (!%p2908_p2)
}
0x1604   :  { %2254 = dma.vmem_to_hbm [thread:$0]  %s2252_s21, 64, %s3598_s13, [#allocation7]   ;;  %v2588_v25 = vpop.f32.mrf.mxu0 }
0x1605   :  { %2930 = dma.done.wait [#allocation7], 64  }
0x1606   :  { %2931 = vsyncadd [#allocation7], 4294967232 }
0x1607   :  { %2258 = vsyncpa [#allocation6], 1 }
0x1608   :  { %2259 = vsyncpa [#allocation9], 1 }
0x1609   :  { %2260 = vsyncpa [#allocation12], 1 }
0x160a   :  { %2261 = vsyncpa [#allocation15], 1 }
0x160b   :  { %2262 = vsyncpa [#allocation18], 1 }
0x160c   :  { %2263 = vsyncpa [#allocation7], 1 }

</bundles_post_ra>
